<compile_context>
chip_gen: v7x
topology: tpu7x:2x2x1
jax: 0.10.0
libtpu: 0.0.40
codegen_flags: <defaults>
</compile_context>

<pallas_src>
import jax
import jax.numpy as jnp
from jax.experimental import pallas as pl
from jax.experimental.pallas import tpu as pltpu


def _round_up(n, m):
    return ((n + m - 1) // m) * m


def _quantize_int8(w):
    """Symmetric per-output-channel int8 weight quantization: w ~= q * s."""
    amax = jnp.max(jnp.abs(w), axis=0, keepdims=True)          # (1, out)
    scale = jnp.maximum(amax, 1e-8) / 127.0                    # (1, out) f32
    q = jnp.clip(jnp.round(w / scale), -127.0, 127.0).astype(jnp.int8)
    return q, scale


def value_net_kernel(x_ref, w1_ref, b1_ref, w2_ref, s2_ref, b2_ref,
                     w3_ref, s3_ref, b3_ref, w4_ref, b4_ref, o_ref):
    # fc1 + ReLU: bf16 MXU matmul, f32 accumulation, bf16 epilogue.
    h = jnp.dot(x_ref[...].astype(jnp.bfloat16), w1_ref[...],
                preferred_element_type=jnp.float32)
    h = jnp.maximum(h.astype(jnp.bfloat16) + b1_ref[...], 0.0)

    # fc2 + ReLU: int8 weights dequantized to bf16 on the VPU (half the DMA);
    # per-output-channel scale folded into the bf16 bias-add epilogue.
    h = jnp.dot(h, w2_ref[...].astype(jnp.bfloat16),
                preferred_element_type=jnp.float32)
    h = jnp.maximum(h.astype(jnp.bfloat16) * s2_ref[...] + b2_ref[...], 0.0)

    # fc3 + ReLU: same recipe.
    h = jnp.dot(h, w3_ref[...].astype(jnp.bfloat16),
                preferred_element_type=jnp.float32)
    h = jnp.maximum(h.astype(jnp.bfloat16) * s3_ref[...] + b3_ref[...], 0.0)

    # fc4: output width 1 -> VPU multiply + cross-lane reduction (keeps the
    # MXU free and avoids a 1-of-256-columns matmul pass).  f32 everywhere.
    v = jnp.sum(h.astype(jnp.float32) * w4_ref[...], axis=-1, keepdims=True)
    o_ref[...] = (v + b4_ref[...]).astype(o_ref.dtype)


def value_net_forward(x, params):
    """x: (B, 23) float32 -> (B, 1) float32 value estimates."""
    B = x.shape[0]
    if B <= 256:
        # Single tile; 16-row rounding gives full bf16 sublane packing.
        tb = _round_up(B, 16)
    else:
        # Up to 1024 rows per tile, but never fewer than 2 tiles so the
        # batch axis can shard across v7x's two TensorCores.
        tb = min(1024, _round_up(pl.cdiv(B, 2), 256))
    b_pad = _round_up(B, tb)
    if b_pad != B:
        x = jnp.pad(x, ((0, b_pad - B), (0, 0)))
    num_tiles = b_pad // tb

    def resident(a):
        # Full-array block with a constant block index: fetched once, stays
        # resident in VMEM across all batch-tile grid steps.
        return pl.BlockSpec(a.shape, lambda i: (0, 0))

    w1, b1 = params["w1"], params["b1"]
    w2, s2, b2 = params["w2"], params["s2"], params["b2"]
    w3, s3, b3 = params["w3"], params["s3"], params["b3"]
    w4, b4 = params["w4"], params["b4"]

    out = pl.pallas_call(
        value_net_kernel,
        out_shape=jax.ShapeDtypeStruct((b_pad, 1), jnp.float32),
        grid=(num_tiles,),
        in_specs=[
            pl.BlockSpec((tb, 23), lambda i: (i, 0)),   # x: streamed per tile
            resident(w1), resident(b1),
            resident(w2), resident(s2), resident(b2),
            resident(w3), resident(s3), resident(b3),
            resident(w4), resident(b4),
        ],
        out_specs=pl.BlockSpec((tb, 1), lambda i: (i, 0)),
        compiler_params=pltpu.CompilerParams(
            dimension_semantics=("parallel",),   # shard batch tiles across TCs
            vmem_limit_bytes=32 << 20,
        ),
    )(x, w1, b1, w2, s2, b2, w3, s3, b3, w4, b4)
    return out[:B]


def init_params(key):
    """PyTorch nn.Linear default init (U[-1/sqrt(fan_in), +1/sqrt(fan_in)]).

    Storage layout (inference-optimized):
      w1        : (23, 512)  bf16   (tiny, not worth quantizing)
      w2, w3    : (512, 512) int8   + s2/s3 (1, 512) bf16 per-column scales
      b1..b3    : (1, 512)   bf16   (bf16 epilogue operands)
      w4        : (1, 512)   f32    (VPU reduction operand, torch layout)
      b4        : (1, 1)     f32
    """
    dims = [(23, 512), (512, 512), (512, 512), (512, 1)]
    params = {}
    for i, (fan_in, fan_out) in enumerate(dims, start=1):
        key, kw, kb = jax.random.split(key, 3)
        bound = float(fan_in) ** -0.5
        w = jax.random.uniform(kw, (fan_in, fan_out), jnp.float32, -bound, bound)
        b = jax.random.uniform(kb, (1, fan_out), jnp.float32, -bound, bound)
        if i == 1:
            params["w1"] = w.astype(jnp.bfloat16)
            params["b1"] = b.astype(jnp.bfloat16)
        elif i in (2, 3):
            q, s = _quantize_int8(w)
            params[f"w{i}"] = q
            params[f"s{i}"] = s.astype(jnp.bfloat16)
            params[f"b{i}"] = b.astype(jnp.bfloat16)
        else:
            params["w4"] = w.T            # (1, 512) f32
            params["b4"] = b              # (1, 1)   f32
    return params


def value_net_reference(x, params):
    """Pure-JAX reference using the SAME stored (bf16 / int8) weights."""
    def deq(q, s):
        return q.astype(jnp.float32) * s.astype(jnp.float32)
    h = jnp.maximum(x @ params["w1"].astype(jnp.float32)
                    + params["b1"].astype(jnp.float32), 0.0)
    h = jnp.maximum(h @ deq(params["w2"], params["s2"])
                    + params["b2"].astype(jnp.float32), 0.0)
    h = jnp.maximum(h @ deq(params["w3"], params["s3"])
                    + params["b3"].astype(jnp.float32), 0.0)
    return h @ params["w4"].T + params["b4"]


if __name__ == "__main__":
    key = jax.random.PRNGKey(0)
    key, kx_small, kx_big = jax.random.split(key, 3)
    params = init_params(key)

    # Small batch (typical per-step PPO query): single 16-row tile, latency
    # bound by the (now int8-halved) weight DMA.
    B = 8
    x = jax.random.normal(kx_small, (B, 23), jnp.float32)
    v = jax.block_until_ready(value_net_forward(x, params))
    v_ref = value_net_reference(x, params)
    assert v.shape == (B, 1), v.shape
    err = float(jnp.max(jnp.abs(v - v_ref)))
    assert err < 2e-2, f"small-batch mismatch: max abs err {err}"

    # Larger ragged batch: exercises padding + a multi-tile grid (TB=256,
    # 2 tiles -> both v7x TensorCores engaged) with VMEM-resident weights.
    Bb = 300
    xb = jax.random.normal(kx_big, (Bb, 23), jnp.float32)
    vb = jax.block_until_ready(value_net_forward(xb, params))
    vb_ref = value_net_reference(xb, params)
    assert vb.shape == (Bb, 1), vb.shape
    err_b = float(jnp.max(jnp.abs(vb - vb_ref)))
    assert err_b < 2e-2, f"batched mismatch: max abs err {err_b}"

    print("KERNEL_OK")
</pallas_src>

<mosaic_0001>
module attributes {stable_mosaic.version = 11 : i64} {
  func.func @value_net_kernel(%arg0: i32, %arg1: memref<16x23xf32, #tpu.memory_space<vmem>>, %arg2: memref<23x512xbf16, #tpu.memory_space<vmem>>, %arg3: memref<1x512xbf16, #tpu.memory_space<vmem>>, %arg4: memref<512x512xi8, #tpu.memory_space<vmem>>, %arg5: memref<1x512xbf16, #tpu.memory_space<vmem>>, %arg6: memref<1x512xbf16, #tpu.memory_space<vmem>>, %arg7: memref<512x512xi8, #tpu.memory_space<vmem>>, %arg8: memref<1x512xbf16, #tpu.memory_space<vmem>>, %arg9: memref<1x512xbf16, #tpu.memory_space<vmem>>, %arg10: memref<1x512xf32, #tpu.memory_space<vmem>>, %arg11: memref<1x1xf32, #tpu.memory_space<vmem>>, %arg12: memref<16x1xf32, #tpu.memory_space<vmem>>) attributes {dimension_semantics = [#tpu.dimension_semantics<parallel>], iteration_bounds = array<i64: 1>, scalar_prefetch = 0 : i64, scratch_operands = 0 : i64, tpu.core_type = #tpu.core_type<tc>, window_params = [{transform_indices = @transform_0, window_bounds = array<i64: 16, 23>}, {pipeline_mode = #tpu.pipeline_mode<synchronous>, transform_indices = @transform_1, window_bounds = array<i64: 23, 512>}, {pipeline_mode = #tpu.pipeline_mode<synchronous>, transform_indices = @transform_2, window_bounds = array<i64: 1, 512>}, {pipeline_mode = #tpu.pipeline_mode<synchronous>, transform_indices = @transform_3, window_bounds = array<i64: 512, 512>}, {pipeline_mode = #tpu.pipeline_mode<synchronous>, transform_indices = @transform_4, window_bounds = array<i64: 1, 512>}, {pipeline_mode = #tpu.pipeline_mode<synchronous>, transform_indices = @transform_5, window_bounds = array<i64: 1, 512>}, {pipeline_mode = #tpu.pipeline_mode<synchronous>, transform_indices = @transform_6, window_bounds = array<i64: 512, 512>}, {pipeline_mode = #tpu.pipeline_mode<synchronous>, transform_indices = @transform_7, window_bounds = array<i64: 1, 512>}, {pipeline_mode = #tpu.pipeline_mode<synchronous>, transform_indices = @transform_8, window_bounds = array<i64: 1, 512>}, {pipeline_mode = #tpu.pipeline_mode<synchronous>, transform_indices = @transform_9, window_bounds = array<i64: 1, 512>}, {pipeline_mode = #tpu.pipeline_mode<synchronous>, transform_indices = @transform_10, window_bounds = array<i64: 1, 1>}, {transform_indices = @transform_11, window_bounds = array<i64: 16, 1>}]} {
    %c0 = arith.constant 0 : index
    %c0_0 = arith.constant 0 : index
    %0 = vector.load %arg1[%c0, %c0_0] : memref<16x23xf32, #tpu.memory_space<vmem>>, vector<16x23xf32>
    %1 = arith.truncf %0 : vector<16x23xf32> to vector<16x23xbf16>
    %c0_1 = arith.constant 0 : index
    %c0_2 = arith.constant 0 : index
    %2 = vector.load %arg2[%c0_1, %c0_2] : memref<23x512xbf16, #tpu.memory_space<vmem>>, vector<23x512xbf16>
    %cst = arith.constant dense<0.000000e+00> : vector<16x512xf32>
    %3 = tpu.matmul %1, %2, %cst {dimension_numbers = #tpu.dot_dimension_numbers<[1], [0], [0], [1], [0, 0, 1, 1], [], []>} : vector<16x23xbf16>, vector<23x512xbf16>, vector<16x512xf32> -> vector<16x512xf32>
    %4 = arith.truncf %3 : vector<16x512xf32> to vector<16x512xbf16>
    %c0_3 = arith.constant 0 : index
    %c0_4 = arith.constant 0 : index
    %5 = vector.load %arg3[%c0_3, %c0_4] : memref<1x512xbf16, #tpu.memory_space<vmem>>, vector<1x512xbf16>
    %6 = vector.broadcast %5 : vector<1x512xbf16> to vector<16x512xbf16>
    %7 = arith.addf %4, %6 : vector<16x512xbf16>
    %cst_5 = arith.constant 0.000000e+00 : bf16
    %8 = vector.broadcast %cst_5 : bf16 to vector<16x512xbf16>
    %9 = arith.maximumf %7, %8 : vector<16x512xbf16>
    %c0_6 = arith.constant 0 : index
    %c0_7 = arith.constant 0 : index
    %10 = vector.load %arg4[%c0_6, %c0_7] : memref<512x512xi8, #tpu.memory_space<vmem>>, vector<512x512xi8>
    %11 = arith.sitofp %10 : vector<512x512xi8> to vector<512x512xbf16>
    %cst_8 = arith.constant dense<0.000000e+00> : vector<16x512xf32>
    %12 = tpu.matmul %9, %11, %cst_8 {dimension_numbers = #tpu.dot_dimension_numbers<[1], [0], [0], [1], [0, 0, 1, 1], [], []>} : vector<16x512xbf16>, vector<512x512xbf16>, vector<16x512xf32> -> vector<16x512xf32>
    %13 = arith.truncf %12 : vector<16x512xf32> to vector<16x512xbf16>
    %c0_9 = arith.constant 0 : index
    %c0_10 = arith.constant 0 : index
    %14 = vector.load %arg5[%c0_9, %c0_10] : memref<1x512xbf16, #tpu.memory_space<vmem>>, vector<1x512xbf16>
    %15 = vector.broadcast %14 : vector<1x512xbf16> to vector<16x512xbf16>
    %16 = arith.mulf %13, %15 : vector<16x512xbf16>
    %c0_11 = arith.constant 0 : index
    %c0_12 = arith.constant 0 : index
    %17 = vector.load %arg6[%c0_11, %c0_12] : memref<1x512xbf16, #tpu.memory_space<vmem>>, vector<1x512xbf16>
    %18 = vector.broadcast %17 : vector<1x512xbf16> to vector<16x512xbf16>
    %19 = arith.addf %16, %18 : vector<16x512xbf16>
    %cst_13 = arith.constant 0.000000e+00 : bf16
    %20 = vector.broadcast %cst_13 : bf16 to vector<16x512xbf16>
    %21 = arith.maximumf %19, %20 : vector<16x512xbf16>
    %c0_14 = arith.constant 0 : index
    %c0_15 = arith.constant 0 : index
    %22 = vector.load %arg7[%c0_14, %c0_15] : memref<512x512xi8, #tpu.memory_space<vmem>>, vector<512x512xi8>
    %23 = arith.sitofp %22 : vector<512x512xi8> to vector<512x512xbf16>
    %cst_16 = arith.constant dense<0.000000e+00> : vector<16x512xf32>
    %24 = tpu.matmul %21, %23, %cst_16 {dimension_numbers = #tpu.dot_dimension_numbers<[1], [0], [0], [1], [0, 0, 1, 1], [], []>} : vector<16x512xbf16>, vector<512x512xbf16>, vector<16x512xf32> -> vector<16x512xf32>
    %25 = arith.truncf %24 : vector<16x512xf32> to vector<16x512xbf16>
    %c0_17 = arith.constant 0 : index
    %c0_18 = arith.constant 0 : index
    %26 = vector.load %arg8[%c0_17, %c0_18] : memref<1x512xbf16, #tpu.memory_space<vmem>>, vector<1x512xbf16>
    %27 = vector.broadcast %26 : vector<1x512xbf16> to vector<16x512xbf16>
    %28 = arith.mulf %25, %27 : vector<16x512xbf16>
    %c0_19 = arith.constant 0 : index
    %c0_20 = arith.constant 0 : index
    %29 = vector.load %arg9[%c0_19, %c0_20] : memref<1x512xbf16, #tpu.memory_space<vmem>>, vector<1x512xbf16>
    %30 = vector.broadcast %29 : vector<1x512xbf16> to vector<16x512xbf16>
    %31 = arith.addf %28, %30 : vector<16x512xbf16>
    %cst_21 = arith.constant 0.000000e+00 : bf16
    %32 = vector.broadcast %cst_21 : bf16 to vector<16x512xbf16>
    %33 = arith.maximumf %31, %32 : vector<16x512xbf16>
    %34 = arith.extf %33 : vector<16x512xbf16> to vector<16x512xf32>
    %c0_22 = arith.constant 0 : index
    %c0_23 = arith.constant 0 : index
    %35 = vector.load %arg10[%c0_22, %c0_23] : memref<1x512xf32, #tpu.memory_space<vmem>>, vector<1x512xf32>
    %36 = vector.broadcast %35 : vector<1x512xf32> to vector<16x512xf32>
    %37 = arith.mulf %34, %36 : vector<16x512xf32>
    %cst_24 = arith.constant dense<0.000000e+00> : vector<16xf32>
    %38 = vector.multi_reduction <add>, %37, %cst_24 [1] : vector<16x512xf32> to vector<16xf32>
    %39 = vector.shape_cast %38 : vector<16xf32> to vector<16x1xf32>
    %c0_25 = arith.constant 0 : index
    %c0_26 = arith.constant 0 : index
    %40 = vector.load %arg11[%c0_25, %c0_26] : memref<1x1xf32, #tpu.memory_space<vmem>>, vector<1x1xf32>
    %41 = vector.broadcast %40 : vector<1x1xf32> to vector<16x1xf32>
    %42 = arith.addf %39, %41 : vector<16x1xf32>
    %c0_27 = arith.constant 0 : index
    %c0_28 = arith.constant 0 : index
    %43 = vector.load %arg12[%c0_27, %c0_28] : memref<16x1xf32, #tpu.memory_space<vmem>>, vector<16x1xf32>
    tpu.vector_store %arg12[%c0_27, %c0_28], %42 {strides = array<i32>} : memref<16x1xf32, #tpu.memory_space<vmem>>, vector<16x1xf32>,
    return
  }
  func.func @transform_0(%arg0: i32) -> (i32, i32) {
    %c0_i32 = arith.constant 0 : i32
    %c0_i32_0 = arith.constant 0 : i32
    return %arg0, %c0_i32 : i32, i32
  }
  func.func @transform_1(%arg0: i32) -> (i32, i32) {
    %c0_i32 = arith.constant 0 : i32
    %c0_i32_0 = arith.constant 0 : i32
    %c0_i32_1 = arith.constant 0 : i32
    return %c0_i32, %c0_i32_0 : i32, i32
  }
  func.func @transform_2(%arg0: i32) -> (i32, i32) {
    %c0_i32 = arith.constant 0 : i32
    %c0_i32_0 = arith.constant 0 : i32
    %c0_i32_1 = arith.constant 0 : i32
    return %c0_i32, %c0_i32_0 : i32, i32
  }
  func.func @transform_3(%arg0: i32) -> (i32, i32) {
    %c0_i32 = arith.constant 0 : i32
    %c0_i32_0 = arith.constant 0 : i32
    %c0_i32_1 = arith.constant 0 : i32
    return %c0_i32, %c0_i32_0 : i32, i32
  }
  func.func @transform_4(%arg0: i32) -> (i32, i32) {
    %c0_i32 = arith.constant 0 : i32
    %c0_i32_0 = arith.constant 0 : i32
    %c0_i32_1 = arith.constant 0 : i32
    return %c0_i32, %c0_i32_0 : i32, i32
  }
  func.func @transform_5(%arg0: i32) -> (i32, i32) {
    %c0_i32 = arith.constant 0 : i32
    %c0_i32_0 = arith.constant 0 : i32
    %c0_i32_1 = arith.constant 0 : i32
    return %c0_i32, %c0_i32_0 : i32, i32
  }
  func.func @transform_6(%arg0: i32) -> (i32, i32) {
    %c0_i32 = arith.constant 0 : i32
    %c0_i32_0 = arith.constant 0 : i32
    %c0_i32_1 = arith.constant 0 : i32
    return %c0_i32, %c0_i32_0 : i32, i32
  }
  func.func @transform_7(%arg0: i32) -> (i32, i32) {
    %c0_i32 = arith.constant 0 : i32
    %c0_i32_0 = arith.constant 0 : i32
    %c0_i32_1 = arith.constant 0 : i32
    return %c0_i32, %c0_i32_0 : i32, i32
  }
  func.func @transform_8(%arg0: i32) -> (i32, i32) {
    %c0_i32 = arith.constant 0 : i32
    %c0_i32_0 = arith.constant 0 : i32
    %c0_i32_1 = arith.constant 0 : i32
    return %c0_i32, %c0_i32_0 : i32, i32
  }
  func.func @transform_9(%arg0: i32) -> (i32, i32) {
    %c0_i32 = arith.constant 0 : i32
    %c0_i32_0 = arith.constant 0 : i32
    %c0_i32_1 = arith.constant 0 : i32
    return %c0_i32, %c0_i32_0 : i32, i32
  }
  func.func @transform_10(%arg0: i32) -> (i32, i32) {
    %c0_i32 = arith.constant 0 : i32
    %c0_i32_0 = arith.constant 0 : i32
    %c0_i32_1 = arith.constant 0 : i32
    return %c0_i32, %c0_i32_0 : i32, i32
  }
  func.func @transform_11(%arg0: i32) -> (i32, i32) {
    %c0_i32 = arith.constant 0 : i32
    %c0_i32_0 = arith.constant 0 : i32
    return %arg0, %c0_i32 : i32, i32
  }
}

</mosaic_0001>

<bundles_post_ra>
// kernel: tpu_custom_call.1
= control target key start
LH: loop header
LB: loop body
LE: loop exit
PB: predicated region body
PF: predicated region fallthrough
CT: control target
= control target key end

     0   :  { %s1749_s0 = inlined_call_operand.hbm [shape: f32[16,23], index: 0, kind: input, shape index: {}]   ;;  %s1750_s1 = inlined_call_operand.hbm [shape: bf16[23,512], index: 1, kind: input, shape index: {}]   ;;  %s1751_s2 = inlined_call_operand.vmem [shape: bf16[1,512], index: 2, kind: input, shape index: {}]   ;;  %s1752_s3 = inlined_call_operand.hbm [shape: s8[512,512], index: 3, kind: input, shape index: {}]   ;;  %s1753_s4 = inlined_call_operand.vmem [shape: bf16[1,512], index: 4, kind: input, shape index: {}]   ;;  %s1754_s5 = inlined_call_operand.vmem [shape: bf16[1,512], index: 5, kind: input, shape index: {}]   ;;  %s1755_s6 = inlined_call_operand.hbm [shape: s8[512,512], index: 6, kind: input, shape index: {}]   ;;  %s1756_s7 = inlined_call_operand.vmem [shape: bf16[1,512], index: 7, kind: input, shape index: {}]   ;;  %s1757_s8 = inlined_call_operand.vmem [shape: bf16[1,512], index: 8, kind: input, shape index: {}]   ;;  %s1758_s9 = inlined_call_operand.vmem [shape: f32[1,512], index: 9, kind: input, shape index: {}]   ;;  %s1759_s10 = inlined_call_operand.<no memory space> [shape: f32[1,1], index: 10, kind: input, shape index: {}]   ;;  %s1760_s11 = inlined_call_operand.vmem [shape: f32[16,1], index: 11, kind: output, shape index: {}]  }
   0x1   :  { %v16_v0 = vstv %s1759_s10 }
   0x2   :  { %17 = vst [vmem:[#allocation2] sm:$0x1] %v16_v0 }
   0x3   :  { %18 = vsyncpa [#allocation4], 0 }
   0x4   :  { %19 = vsyncpa [#allocation6], 0 }
   0x5   :  { %20 = vsyncpa [#allocation9], 0  ;;  %s1499_s19 = smov [#allocation5]   ;;  %s1405_s23 = scalar_lea.hbm %s1750_s1, 768 }
   0x6   :  { %s38_s20 = sshll.u32 %s1499_s19, 4  ;;  %p1406_p0 = scmp.ne.s32.totalorder %s1750_s1, %s1405_s23  ;;  %s39_s20 = int_to_ptr.vmem [resolvable:$true] %s38_s20 }
   0x7   :  { %p1409_p1 = scmp.lt.u32.totalorder %s1405_s23, %s1750_s1 }
   0x9   :  { %p1411_p2 = pnand %p1409_p1, %p1406_p0 }
   0xb   :  { %1414 = shalt.err (!%p1411_p2)
}
   0xc   :  { %s1415_s10 = scalar_lea.vmem %s39_s20, 768  ;;  %p1420_p4 = scmp.lt.s32.totalorder %s39_s20, %s39_s20 }
   0xd   :  { %p1416_p3 = scmp.ne.s32.totalorder %s39_s20, %s1415_s10  ;;  %p1421_p5 = scmp.lt.s32.totalorder %s1415_s10, %s1415_s10 }
   0xf   :  { %p1422_p6 = por %p1421_p5, %p1420_p4 }
  0x11   :  { %p1423_p7 = pnand %p1422_p6, %p1416_p3 }
  0x13   :  { %1426 = shalt.err (!%p1423_p7)
}
  0x14   :  { %s1500_s28 = smov 256   ;;  %s1501_s29 = smov 16  }
  0x15   :  { %44 = dma.hbm_to_vmem [thread:$0]  %s1750_s1, 768, %s39_s20, [#allocation6], %s1500_s28, %s1500_s28, %s1501_s29  }
  0x16   :  { %s1502_s13 = smov [#allocation3]   ;;  %s1427_s17 = scalar_lea.hbm %s1749_s0, 256 }
  0x17   :  { %s26_s14 = sshll.u32 %s1502_s13, 4  ;;  %p1428_p8 = scmp.ne.s32.totalorder %s1749_s0, %s1427_s17  ;;  %s27_s14 = int_to_ptr.vmem [resolvable:$true] %s26_s14 }
  0x18   :  { %p1431_p9 = scmp.lt.u32.totalorder %s1427_s17, %s1749_s0 }
  0x1a   :  { %p1433_p10 = pnand %p1431_p9, %p1428_p8 }
  0x1c   :  { %1436 = shalt.err (!%p1433_p10)
}
  0x1d   :  { %s1437_s23 = scalar_lea.vmem %s27_s14, 256  ;;  %p1442_p12 = scmp.lt.s32.totalorder %s27_s14, %s27_s14 }
  0x1e   :  { %p1438_p11 = scmp.ne.s32.totalorder %s27_s14, %s1437_s23  ;;  %p1443_p13 = scmp.lt.s32.totalorder %s1437_s23, %s1437_s23 }
  0x20   :  { %p1444_p0 = por %p1443_p13, %p1442_p12 }
  0x22   :  { %p1445_p1 = pnand %p1444_p0, %p1438_p11 }
  0x24   :  { %1448 = shalt.err (!%p1445_p1)
}
  0x25   :  { %s1503_s1 = smov 128   ;;  %s1504_s20 = smov 8  }
  0x26   :  { %32 = dma.hbm_to_vmem [thread:$0]  %s1749_s0, 256, %s27_s14, [#allocation4], %s1503_s1, %s1503_s1, %s1504_s20  }
  0x27   :  { %s1505_s26 = smov [#allocation7]   ;;  %s1449_s29 = scalar_lea.hbm %s1752_s3, 8192 }
  0x28   :  { %s52_s27 = sshll.u32 %s1505_s26, 4  ;;  %p1450_p2 = scmp.ne.s32.totalorder %s1752_s3, %s1449_s29  ;;  %s53_s27 = int_to_ptr.vmem [resolvable:$true] %s52_s27 }
  0x29   :  { %p1453_p3 = scmp.lt.u32.totalorder %s1449_s29, %s1752_s3 }
  0x2b   :  { %p1455_p4 = pnand %p1453_p3, %p1450_p2 }
  0x2d   :  { %1458 = shalt.err (!%p1455_p4)
}
  0x2e   :  { %s1459_s16 = scalar_lea.vmem %s53_s27, 8192  ;;  %p1464_p6 = scmp.lt.s32.totalorder %s53_s27, %s53_s27 }
  0x2f   :  { %p1460_p5 = scmp.ne.s32.totalorder %s53_s27, %s1459_s16  ;;  %p1465_p7 = scmp.lt.s32.totalorder %s1459_s16, %s1459_s16 }
  0x31   :  { %p1466_p8 = por %p1465_p7, %p1464_p6 }
  0x33   :  { %p1467_p9 = pnand %p1466_p8, %p1460_p5 }
  0x35   :  { %1470 = shalt.err (!%p1467_p9)
}
  0x36   :  { %s1506_s0 = smov 512   ;;  %s1507_s14 = smov 32  }
  0x37   :  { %58 = dma.hbm_to_vmem [thread:$0]  %s1752_s3, 8192, %s53_s27, [#allocation6], %s1506_s0, %s1506_s0, %s1507_s14  }
  0x38   :  { %s1508_s19 = smov [#allocation8]   ;;  %s1471_s1 = scalar_lea.hbm %s1755_s6, 8192 }
  0x39   :  { %s68_s21 = sshll.u32 %s1508_s19, 4  ;;  %p1472_p10 = scmp.ne.s32.totalorder %s1755_s6, %s1471_s1  ;;  %s69_s21 = int_to_ptr.vmem [resolvable:$true] %s68_s21 }
  0x3a   :  { %p1475_p11 = scmp.lt.u32.totalorder %s1471_s1, %s1755_s6 }
  0x3c   :  { %p1477_p12 = pnand %p1475_p11, %p1472_p10 }
  0x3e   :  { %1480 = shalt.err (!%p1477_p12)
}
  0x3f   :  { %s1481_s10 = scalar_lea.vmem %s69_s21, 8192  ;;  %p1486_p0 = scmp.lt.s32.totalorder %s69_s21, %s69_s21 }
  0x40   :  { %p1482_p13 = scmp.ne.s32.totalorder %s69_s21, %s1481_s10  ;;  %p1487_p1 = scmp.lt.s32.totalorder %s1481_s10, %s1481_s10 }
  0x42   :  { %p1488_p2 = por %p1487_p1, %p1486_p0 }
  0x44   :  { %p1489_p3 = pnand %p1488_p2, %p1482_p13 }
  0x46   :  { %1492 = shalt.err (!%p1489_p3)
}
  0x47   :  { %74 = dma.hbm_to_vmem [thread:$0]  %s1755_s6, 8192, %s69_s21, [#allocation9], %s1506_s0, %s1506_s0, %s1507_s14  }
  0x48   :  { %1493 = dma.done.wait [#allocation4], 256  }
  0x49   :  { %1494 = vsyncadd [#allocation4], 4294967040 }
  0x4a   :  { %1495 = dma.done.wait [#allocation6], 8960  }
  0x4b   :  { %1496 = vsyncadd [#allocation6], 4294958336 }
  0x4c   :  { %1497 = dma.done.wait [#allocation9], 8192  }
  0x4d   :  { %1498 = vsyncadd [#allocation9], 4294959104  ;;  %v1509_v1 = vmov 0   ;;  %vm139_vm0 = vcmask 1042432   ;;  %vm140_vm1 = vcmask 1043456   ;;  %v1510_v2 = vmov 65535  }
  0x4e   :  { %187 = vmatprep.mubr.bf16.mxu0 %v1509_v1  ;;  %230 = vmatprep.mubr.bf16.mxu1 %v1509_v1  ;;  %v141_v3 = vsel %vm139_vm0, 4294967295, %v1510_v2  ;;  %v1395_v4 = vld [vmem:[#allocation5 + $0x4] ss:$16 sps:$4 sm:$0xff]   ;;  %v1397_v5 = vld [vmem:[#allocation5] ss:$16 sps:$4 sm:$0xff]   ;;  %v97_v11 = vld [vmem:[#allocation3 + $0x8] sm:$0xff] }
  0x4f   :  { %v103_v6 = vld [vmem:[#allocation5 + $0x20] sm:$0xff]  ;;  %v142_v7 = vsel %vm140_vm1, %v141_v3, 0  ;;  %v96_v8 = vld [vmem:[#allocation3] sm:$0xff]  ;;  %155 = vmatprep.subr.bf16.mxu0 %v1395_v4  ;;  %v1400_v12 = vld [vmem:[#allocation5 + $0xc] ss:$16 sps:$4 sm:$0xff]   ;;  %vm135_vm2 = vcmask 187392  }
  0x50   :  { %v1355_v9 = vcombine.high %v103_v6, %v103_v6  ;;  %v1354_v10 = vcombine.low %v103_v6, %v103_v6  ;;  %156 = vmatpush1.bf16.msra.mxu0 %v1397_v5  ;;  %v1402_v13 = vld [vmem:[#allocation5 + $0x8] ss:$16 sps:$4 sm:$0xff]   ;;  %v307_v21 = vld [vmem:[#allocation7] sm:$0xff]  ;;  %198 = vmatprep.subr.bf16.mxu1 %v1400_v12  ;;  %v98_v23 = vpack.c.bf16 %v97_v11, %v96_v8  ;;  %v309_v28 = vld [vmem:[#allocation7 + $0x10] sm:$0xff]  ;;  %vm1340_vm3 = vcmask 7168  }
  0x51   :  { %v104_v14 = vld [vmem:[#allocation5 + $0x28] sm:$0xff]  ;;  %v308_v19 = vld [vmem:[#allocation7 + $0x8] sm:$0xff]  ;;  %199 = vmatpush1.bf16.msra.mxu1 %v1402_v13  ;;  %v371_v27 = vunpack.c.l.s8.bf16 %v307_v21  ;;  %v373_v31 = vunpack.c.l.s8.bf16 %v309_v28  ;;  %v375_v33 = vunpack.c.h.s8.bf16 %v307_v21  ;;  %v311_v36 = vld [vmem:[#allocation7 + $0x20] sm:$0xff]  ;;  %v377_v37 = vunpack.c.h.s8.bf16 %v309_v28 }
  0x52   :  { %v147_v15 = vand.u32 %v1355_v9, %v142_v7  ;;  %v144_v16 = vand.u32 %v1354_v10, %v142_v7  ;;  %v1357_v17 = vcombine.high %v104_v14, %v104_v14  ;;  %v1356_v18 = vcombine.low %v104_v14, %v104_v14  ;;  %v310_v20 = vld [vmem:[#allocation7 + $0x18] sm:$0xff]  ;;  %v312_v30 = vld [vmem:[#allocation7 + $0x28] sm:$0xff]  ;;  %v313_v40 = vld [vmem:[#allocation7 + $0x30] sm:$0xff] }
  0x53   :  { %v372_v22 = vunpack.c.l.s8.bf16 %v308_v19  ;;  %v374_v26 = vunpack.c.l.s8.bf16 %v310_v20  ;;  %v376_v29 = vunpack.c.h.s8.bf16 %v308_v19  ;;  %v378_v32 = vunpack.c.h.s8.bf16 %v310_v20  ;;  %v314_v35 = vld [vmem:[#allocation7 + $0x38] sm:$0xff]  ;;  %v316_v42 = vld [vmem:[#allocation7 + $0x48] sm:$0xff]  ;;  %v315_v48 = vld [vmem:[#allocation7 + $0x40] sm:$0xff] }
  0x54   :  { %157 = vmatprep.subr.bf16.mxu0 %v147_v15  ;;  %v153_v24 = vand.u32 %v1357_v17, %v142_v7  ;;  %v150_v25 = vand.u32 %v1356_v18, %v142_v7  ;;  %v380_v34 = vunpack.c.l.s8.bf16 %v312_v30  ;;  %v382_v38 = vunpack.c.l.s8.bf16 %v314_v35  ;;  %v318_v47 = vld [vmem:[#allocation7 + $0x58] sm:$0xff]  ;;  %v317_v52 = vld [vmem:[#allocation7 + $0x50] sm:$0xff]  ;;  %v320_v54 = vld [vmem:[#allocation7 + $0x68] sm:$0xff] }
  0x55   :  { %158 = vmatpush1.bf16.msra.mxu0 %v144_v16  ;;  %v379_v39 = vunpack.c.l.s8.bf16 %v311_v36  ;;  %v384_v41 = vunpack.c.h.s8.bf16 %v312_v30  ;;  %v381_v43 = vunpack.c.l.s8.bf16 %v313_v40  ;;  %v386_v44 = vunpack.c.h.s8.bf16 %v314_v35  ;;  %v322_v59 = vld [vmem:[#allocation7 + $0x78] sm:$0xff]  ;;  %v319_v60 = vld [vmem:[#allocation7 + $0x60] sm:$0xff]  ;;  %v321_v0 = vld [vmem:[#allocation7 + $0x70] sm:$0xff] }
  0x56   :  { %200 = vmatprep.subr.bf16.mxu1 %v153_v24  ;;  %499 = vmatprep.subr.bf16.mxu0 %v372_v22  ;;  %v383_v45 = vunpack.c.h.s8.bf16 %v311_v36  ;;  %v388_v46 = vunpack.c.l.s8.bf16 %v316_v42  ;;  %v385_v49 = vunpack.c.h.s8.bf16 %v313_v40  ;;  %v390_v50 = vunpack.c.l.s8.bf16 %v318_v47  ;;  %v324_v3 = vld [vmem:[#allocation7 + $0x88] sm:$0xff]  ;;  %v326_v8 = vld [vmem:[#allocation7 + $0x98] sm:$0xff]  ;;  %v323_v9 = vld [vmem:[#allocation7 + $0x80] sm:$0xff] }
  0x57   :  { %201 = vmatpush1.bf16.msra.mxu1 %v150_v25  ;;  %v387_v51 = vunpack.c.l.s8.bf16 %v315_v48  ;;  %v392_v53 = vunpack.c.h.s8.bf16 %v316_v42  ;;  %v389_v55 = vunpack.c.l.s8.bf16 %v317_v52  ;;  %v394_v56 = vunpack.c.h.s8.bf16 %v318_v47  ;;  %v325_v13 = vld [vmem:[#allocation7 + $0x90] sm:$0xff]  ;;  %v328_v15 = vld [vmem:[#allocation7 + $0xa8] sm:$0xff]  ;;  %v330_v20 = vld [vmem:[#allocation7 + $0xb8] sm:$0xff] }
  0x58   :  { %1358 = vmatmul.mubr.msk.bf16.vlgmr.msra.gmra.mrb[0].mxu0 %vm135_vm2, %v98_v23  ;;  %585 = vmatprep.subr.bf16.mxu1 %v374_v26  ;;  %v391_v57 = vunpack.c.h.s8.bf16 %v315_v48  ;;  %v396_v58 = vunpack.c.l.s8.bf16 %v320_v54  ;;  %v393_v61 = vunpack.c.h.s8.bf16 %v317_v52  ;;  %v398_v62 = vunpack.c.l.s8.bf16 %v322_v59  ;;  %v327_v21 = vld [vmem:[#allocation7 + $0xa0] sm:$0xff]  ;;  %v329_v25 = vld [vmem:[#allocation7 + $0xb0] sm:$0xff] }
  0x59   :  { %500 = vmatpush1.bf16.msra.mxu0 %v371_v27  ;;  %v395_v63 = vunpack.c.l.s8.bf16 %v319_v60  ;;  %v400_v2 = vunpack.c.h.s8.bf16 %v320_v54  ;;  %v397_v4 = vunpack.c.l.s8.bf16 %v321_v0  ;;  %v402_v5 = vunpack.c.h.s8.bf16 %v322_v59  ;;  %v332_v27 = vld [vmem:[#allocation7 + $0xc8] sm:$0xff]  ;;  %v335_v47 = vld [vmem:[#allocation7 + $0xe0] sm:$0xff]  ;;  %v337_v48 = vld [vmem:[#allocation7 + $0xf0] sm:$0xff] }
  0x5a   :  { %501 = vmatprep.subr.bf16.mxu0 %v376_v29  ;;  %1359 = vmatmul.mubr.msk.bf16.vlgmr.msra.gmra.mrb[0].mxu1 %vm135_vm2, %v98_v23  ;;  %v399_v6 = vunpack.c.h.s8.bf16 %v319_v60  ;;  %v404_v7 = vunpack.c.l.s8.bf16 %v324_v3  ;;  %v401_v10 = vunpack.c.h.s8.bf16 %v321_v0  ;;  %v406_v11 = vunpack.c.l.s8.bf16 %v326_v8  ;;  %v1360_v0 = vld.sshfl [vmem:[%s1751_s2] sm:$0x33 pattern:$0x75316420] }
  0x5b   :  { %586 = vmatpush1.bf16.msra.mxu1 %v373_v31  ;;  %v403_v12 = vunpack.c.l.s8.bf16 %v323_v9  ;;  %v408_v14 = vunpack.c.h.s8.bf16 %v324_v3  ;;  %v405_v16 = vunpack.c.l.s8.bf16 %v325_v13  ;;  %v410_v17 = vunpack.c.h.s8.bf16 %v326_v8 }
  0x5c   :  { %587 = vmatprep.subr.bf16.mxu1 %v378_v32  ;;  %v407_v18 = vunpack.c.h.s8.bf16 %v323_v9  ;;  %v412_v19 = vunpack.c.l.s8.bf16 %v328_v15  ;;  %v409_v22 = vunpack.c.h.s8.bf16 %v325_v13  ;;  %v414_v23 = vunpack.c.l.s8.bf16 %v330_v20  ;;  %v334_v32 = vld [vmem:[#allocation7 + $0xd8] sm:$0xff] }
  0x5d   :  { %502 = vmatpush1.bf16.msra.mxu0 %v375_v33  ;;  %v411_v24 = vunpack.c.l.s8.bf16 %v327_v21  ;;  %v416_v26 = vunpack.c.h.s8.bf16 %v328_v15  ;;  %v413_v28 = vunpack.c.l.s8.bf16 %v329_v25  ;;  %v418_v29 = vunpack.c.h.s8.bf16 %v330_v20  ;;  %v331_v33 = vld [vmem:[#allocation7 + $0xc0] sm:$0xff] }
  0x5e   :  { %503 = vmatprep.subr.bf16.mxu0 %v380_v34  ;;  %v415_v30 = vunpack.c.h.s8.bf16 %v327_v21  ;;  %v420_v31 = vunpack.c.l.s8.bf16 %v332_v27  ;;  %v417_v34 = vunpack.c.h.s8.bf16 %v329_v25  ;;  %v422_v35 = vunpack.c.l.s8.bf16 %v334_v32 }
  0x5f   :  { %588 = vmatpush1.bf16.msra.mxu1 %v377_v37  ;;  %v419_v36 = vunpack.c.l.s8.bf16 %v331_v33  ;;  %v333_v37 = vld [vmem:[#allocation7 + $0xd0] sm:$0xff]  ;;  %v426_v40 = vunpack.c.h.s8.bf16 %v334_v32  ;;  %v433_v54 = vunpack.c.h.s8.bf16 %v337_v48  ;;  %v1511_v59 = vmov 1966171168  }
  0x60   :  { %589 = vmatprep.subr.bf16.mxu1 %v382_v38  ;;  %v424_v38 = vunpack.c.h.s8.bf16 %v332_v27  ;;  %v425_v42 = vunpack.c.h.s8.bf16 %v333_v37  ;;  %v256_v60 = vunpack.c.l.s4 %v1511_v59  ;;  %v254_v3 = vcombine.high %v1360_v0, %v1360_v0 }
  0x61   :  { %504 = vmatpush1.bf16.msra.mxu0 %v379_v39  ;;  %v421_v39 = vunpack.c.l.s8.bf16 %v333_v37  ;;  %v344_v37 = vld [vmem:[#allocation7 + $0x128] sm:$0xff] }
  0x62   :  { %505 = vmatprep.subr.bf16.mxu0 %v384_v41  ;;  %v423_v41 = vunpack.c.h.s8.bf16 %v331_v33 }
  0x63   :  { %590 = vmatpush1.bf16.msra.mxu1 %v381_v43  ;;  %v336_v43 = vld [vmem:[#allocation7 + $0xe8] sm:$0xff] }
  0x64   :  { %591 = vmatprep.subr.bf16.mxu1 %v386_v44  ;;  %v338_v44 = vld [vmem:[#allocation7 + $0xf8] sm:$0xff] }
  0x65   :  { %506 = vmatpush1.bf16.msra.mxu0 %v383_v45  ;;  %v428_v45 = vunpack.c.l.s8.bf16 %v336_v43  ;;  %v434_v52 = vunpack.c.h.s8.bf16 %v338_v44 }
  0x66   :  { %507 = vmatprep.subr.bf16.mxu0 %v388_v46  ;;  %v430_v46 = vunpack.c.l.s8.bf16 %v338_v44  ;;  %v343_v44 = vld [vmem:[#allocation7 + $0x120] sm:$0xff] }
  0x67   :  { %592 = vmatpush1.bf16.msra.mxu1 %v385_v49  ;;  %v427_v49 = vunpack.c.l.s8.bf16 %v335_v47 }
  0x68   :  { %593 = vmatprep.subr.bf16.mxu1 %v390_v50  ;;  %v429_v50 = vunpack.c.l.s8.bf16 %v337_v48  ;;  %v448_v48 = vunpack.c.h.s8.bf16 %v344_v37 }
  0x69   :  { %508 = vmatpush1.bf16.msra.mxu0 %v387_v51  ;;  %v432_v51 = vunpack.c.h.s8.bf16 %v336_v43 }
  0x6a   :  { %509 = vmatprep.subr.bf16.mxu0 %v392_v53  ;;  %v431_v53 = vunpack.c.h.s8.bf16 %v335_v47 }
  0x6b   :  { %594 = vmatpush1.bf16.msra.mxu1 %v389_v55  ;;  %v340_v55 = vld [vmem:[#allocation7 + $0x108] sm:$0xff] }
  0x6c   :  { %595 = vmatprep.subr.bf16.mxu1 %v394_v56  ;;  %v342_v56 = vld [vmem:[#allocation7 + $0x118] sm:$0xff] }
  0x6d   :  { %510 = vmatpush1.bf16.msra.mxu0 %v391_v57  ;;  %v436_v57 = vunpack.c.l.s8.bf16 %v340_v55 }
  0x6e   :  { %511 = vmatprep.subr.bf16.mxu0 %v396_v58  ;;  %v438_v58 = vunpack.c.l.s8.bf16 %v342_v56 }
  0x6f   :  { %596 = vmatpush1.bf16.msra.mxu1 %v393_v61  ;;  %v258_v61 = vlaneseq }
  0x70   :  { %597 = vmatprep.subr.bf16.mxu1 %v398_v62  ;;  %v257_v62 = vunpack.c.0.s8 %v256_v60 }
  0x71   :  { %512 = vmatpush1.bf16.msra.mxu0 %v395_v63  ;;  %v1627_v63 = vshrl.u32 %v258_v61, 7 }
  0x72   :  { %513 = vmatprep.subr.bf16.mxu0 %v400_v2 }
  0x73   :  { %598 = vmatpush1.bf16.msra.mxu1 %v397_v4  ;;  %v1633_v2 = vsub.s32 %v257_v62, %v1627_v63  ;;  %v352_v62 = vld [vmem:[#allocation7 + $0x168] sm:$0xff] }
  0x74   :  { %599 = vmatprep.subr.bf16.mxu1 %v402_v5 }
  0x75   :  { %514 = vmatpush1.bf16.msra.mxu0 %v399_v6  ;;  %v1636_v4 = vrot.slane %v1360_v0, %v1633_v2  ;;  %v268_v5 = vrot.slane %v254_v3, %v1633_v2  ;;  %v354_v0 = vld [vmem:[#allocation7 + $0x178] sm:$0xff] }
  0x76   :  { %515 = vmatprep.subr.bf16.mxu0 %v404_v7  ;;  %v1642_v7 = vsub.s32 0, %v1627_v63 }
  0x77   :  { %600 = vmatpush1.bf16.msra.mxu1 %v401_v10  ;;  %v272_v6 = vpack.i.b16 %v1636_v4, %v1636_v4  ;;  %v270_v8 = vcombine.high %v268_v5, %v268_v5  ;;  %v279_v9 = vpack.i.b16 %v268_v5, %v268_v5 }
  0x78   :  { %601 = vmatprep.subr.bf16.mxu1 %v406_v11 }
  0x79   :  { %516 = vmatpush1.bf16.msra.mxu0 %v403_v12  ;;  %v277_v12 = vrot.slane %v272_v6, %v1642_v7  ;;  %v293_v13 = vpack.i.b16 %v270_v8, %v270_v8  ;;  %v284_v15 = vrot.slane %v279_v9, %v1642_v7  ;;  %v460_v6 = vunpack.c.l.s8.bf16 %v352_v62  ;;  %v351_v9 = vld [vmem:[#allocation7 + $0x160] sm:$0xff] }
  0x7a   :  { %517 = vmatprep.subr.bf16.mxu0 %v408_v14  ;;  %v462_v8 = vunpack.c.l.s8.bf16 %v354_v0 }
  0x7b   :  { %602 = vmatpush1.bf16.msra.mxu1 %v405_v16  ;;  %v298_v25 = vrot.slane %v293_v13, %v1642_v7  ;;  %v464_v13 = vunpack.c.h.s8.bf16 %v352_v62  ;;  %v367_v62 = vld [vmem:[#allocation7 + $0x1e0] sm:$0xff] }
  0x7c   :  { %603 = vmatprep.subr.bf16.mxu1 %v410_v17 }
  0x7d   :  { %518 = vmatpush1.bf16.msra.mxu0 %v407_v18 }
  0x7e   :  { %519 = vmatprep.subr.bf16.mxu0 %v412_v19 }
  0x7f   :  { %604 = vmatpush1.bf16.msra.mxu1 %v409_v22  ;;  %v339_v22 = vld [vmem:[#allocation7 + $0x100] sm:$0xff] }
  0x80   :  { %605 = vmatprep.subr.bf16.mxu1 %v414_v23  ;;  %v341_v23 = vld [vmem:[#allocation7 + $0x110] sm:$0xff] }
  0x81   :  { %520 = vmatpush1.bf16.msra.mxu0 %v411_v24  ;;  %v437_v32 = vunpack.c.l.s8.bf16 %v341_v23 }
  0x82   :  { %521 = vmatprep.subr.bf16.mxu0 %v416_v26 }
  0x83   :  { %606 = vmatpush1.bf16.msra.mxu1 %v413_v28 }
  0x84   :  { %607 = vmatprep.subr.bf16.mxu1 %v418_v29 }
  0x85   :  { %522 = vmatpush1.bf16.msra.mxu0 %v415_v30 }
  0x86   :  { %523 = vmatprep.subr.bf16.mxu0 %v420_v31  ;;  %v435_v31 = vunpack.c.l.s8.bf16 %v339_v22 }
  0x87   :  { %608 = vmatpush1.bf16.msra.mxu1 %v417_v34  ;;  %v440_v34 = vunpack.c.h.s8.bf16 %v340_v55 }
  0x88   :  { %609 = vmatprep.subr.bf16.mxu1 %v422_v35  ;;  %v442_v35 = vunpack.c.h.s8.bf16 %v342_v56  ;;  %v347_v56 = vld [vmem:[#allocation7 + $0x140] sm:$0xff] }
  0x89   :  { %524 = vmatpush1.bf16.msra.mxu0 %v419_v36  ;;  %v455_v3 = vunpack.c.h.s8.bf16 %v347_v56 }
  0x8a   :  { %525 = vmatprep.subr.bf16.mxu0 %v424_v38  ;;  %v346_v38 = vld [vmem:[#allocation7 + $0x138] sm:$0xff] }
  0x8b   :  { %610 = vmatpush1.bf16.msra.mxu1 %v421_v39  ;;  %v446_v43 = vunpack.c.l.s8.bf16 %v346_v38 }
  0x8c   :  { %611 = vmatprep.subr.bf16.mxu1 %v426_v40  ;;  %v439_v40 = vunpack.c.h.s8.bf16 %v339_v22  ;;  %v355_v22 = vld [vmem:[#allocation7 + $0x180] sm:$0xff] }
  0x8d   :  { %526 = vmatpush1.bf16.msra.mxu0 %v423_v41  ;;  %v441_v41 = vunpack.c.h.s8.bf16 %v341_v23  ;;  %v357_v23 = vld [vmem:[#allocation7 + $0x190] sm:$0xff] }
  0x8e   :  { %527 = vmatprep.subr.bf16.mxu0 %v428_v45  ;;  %v345_v45 = vld [vmem:[#allocation7 + $0x130] sm:$0xff] }
  0x8f   :  { %612 = vmatpush1.bf16.msra.mxu1 %v425_v42  ;;  %v444_v42 = vunpack.c.l.s8.bf16 %v344_v37  ;;  %v445_v47 = vunpack.c.l.s8.bf16 %v345_v45  ;;  %v361_v37 = vld [vmem:[#allocation7 + $0x1b0] sm:$0xff] }
  0x90   :  { %613 = vmatprep.subr.bf16.mxu1 %v430_v46  ;;  %v443_v46 = vunpack.c.l.s8.bf16 %v343_v44 }
  0x91   :  { %528 = vmatpush1.bf16.msra.mxu0 %v427_v49  ;;  %v450_v49 = vunpack.c.h.s8.bf16 %v346_v38 }
  0x92   :  { %529 = vmatprep.subr.bf16.mxu0 %v432_v51  ;;  %v350_v51 = vld [vmem:[#allocation7 + $0x158] sm:$0xff] }
  0x93   :  { %614 = vmatpush1.bf16.msra.mxu1 %v429_v50  ;;  %v348_v50 = vld [vmem:[#allocation7 + $0x148] sm:$0xff]  ;;  %v454_v55 = vunpack.c.l.s8.bf16 %v350_v51  ;;  %v458_v61 = vunpack.c.h.s8.bf16 %v350_v51 }
  0x94   :  { %615 = vmatprep.subr.bf16.mxu1 %v434_v52  ;;  %v447_v52 = vunpack.c.h.s8.bf16 %v343_v44  ;;  %v456_v60 = vunpack.c.h.s8.bf16 %v348_v50 }
  0x95   :  { %530 = vmatpush1.bf16.msra.mxu0 %v431_v53  ;;  %v449_v53 = vunpack.c.h.s8.bf16 %v345_v45  ;;  %v481_v45 = vunpack.c.h.s8.bf16 %v361_v37 }
  0x96   :  { %542 = vmatprep.subr.bf16.mxu0 %v436_v57  ;;  %v349_v57 = vld [vmem:[#allocation7 + $0x150] sm:$0xff] }
  0x97   :  { %616 = vmatpush1.bf16.msra.mxu1 %v433_v54  ;;  %v452_v54 = vunpack.c.l.s8.bf16 %v348_v50  ;;  %v453_v59 = vunpack.c.l.s8.bf16 %v349_v57  ;;  %v457_v5 = vunpack.c.h.s8.bf16 %v349_v57 }
  0x98   :  { %628 = vmatprep.subr.bf16.mxu1 %v438_v58  ;;  %v451_v58 = vunpack.c.l.s8.bf16 %v347_v56  ;;  %v370_v56 = vld [vmem:[#allocation7 + $0x1f8] sm:$0xff] }
 0x12b   :  { %v189_v10 = vpop.f32.mrb[0].mxu0 }
 0x12c   :  { %v191_v11 = vpop.f32.mrb[1].mxu0 }
 0x12d   :  { %v193_v14 = vpop.f32.mrb[2].mxu0  ;;  %v1646_v18 = vpop.f32.mrb[0].mxu1 }
 0x12e   :  { %v241_v16 = vpack.c.bf16 %v193_v14, %v189_v10  ;;  %v195_v17 = vpop.f32.mrb[3].mxu0  ;;  %v234_v20 = vpop.f32.mrb[1].mxu1  ;;  %v353_v10 = vld [vmem:[#allocation7 + $0x170] sm:$0xff]  ;;  %v466_v14 = vunpack.c.h.s8.bf16 %v354_v0 }
 0x12f   :  { %v242_v19 = vpack.c.bf16 %v195_v17, %v191_v11  ;;  %v1648_v24 = vpop.f32.mrb[2].mxu1  ;;  %v459_v11 = vunpack.c.l.s8.bf16 %v351_v9  ;;  %v463_v17 = vunpack.c.h.s8.bf16 %v351_v9  ;;  %v369_v0 = vld [vmem:[#allocation7 + $0x1f0] sm:$0xff]  ;;  %v796_v9 = vld [vmem:[#allocation8 + $0x8] sm:$0xff] }
 0x130   :  { %v299_v21 = vadd.bf16 %v277_v12, %v241_v16  ;;  %v243_v27 = vpack.c.bf16 %v1648_v24, %v1646_v18  ;;  %v238_v28 = vpop.f32.mrb[3].mxu1  ;;  %v461_v12 = vunpack.c.l.s8.bf16 %v353_v10  ;;  %v358_v16 = vld [vmem:[#allocation7 + $0x198] sm:$0xff] }
 0x131   :  { %v300_v26 = vadd.bf16 %v284_v15, %v242_v19  ;;  %v244_v29 = vpack.c.bf16 %v238_v28, %v234_v20  ;;  %v356_v15 = vld [vmem:[#allocation7 + $0x188] sm:$0xff]  ;;  %v465_v19 = vunpack.c.h.s8.bf16 %v353_v10  ;;  %v798_v10 = vld [vmem:[#allocation8 + $0x18] sm:$0xff] }
 0x132   :  { %v303_v33 = vmax.bf16 %v1509_v1, %v299_v21  ;;  %v468_v20 = vunpack.c.l.s8.bf16 %v356_v15  ;;  %v470_v21 = vunpack.c.l.s8.bf16 %v358_v16  ;;  %v472_v28 = vunpack.c.h.s8.bf16 %v356_v15 }
 0x133   :  { %v304_v30 = vmax.bf16 %v1509_v1, %v300_v26  ;;  %v302_v36 = vadd.bf16 %v298_v25, %v244_v29  ;;  %v467_v25 = vunpack.c.l.s8.bf16 %v355_v22  ;;  %v469_v26 = vunpack.c.l.s8.bf16 %v357_v23 }
 0x134   :  { %v474_v29 = vunpack.c.h.s8.bf16 %v358_v16  ;;  %v862_v15 = vunpack.c.l.s8.bf16 %v798_v10  ;;  %v795_v16 = vld [vmem:[#allocation8] sm:$0xff] }
 0x135   :  { %531 = vmatprep.mubr.bf16.mxu0 %v304_v30  ;;  %617 = vmatprep.mubr.bf16.mxu1 %v304_v30  ;;  %v306_v39 = vmax.bf16 %v1509_v1, %v302_v36  ;;  %v360_v30 = vld [vmem:[#allocation7 + $0x1a8] sm:$0xff]  ;;  %v359_v36 = vld [vmem:[#allocation7 + $0x1a0] sm:$0xff]  ;;  %v863_v18 = vunpack.c.h.s8.bf16 %v795_v16 }
 0x136   :  { %532 = vmatmul.mubr.bf16.vlgmr.msra.gmra.mrb[4].mxu0 %v303_v33  ;;  %618 = vmatmul.mubr.bf16.vlgmr.msra.gmra.mrb[4].mxu1 %v303_v33  ;;  %v473_v33 = vunpack.c.h.s8.bf16 %v357_v23  ;;  %v475_v38 = vunpack.c.l.s8.bf16 %v359_v36  ;;  %v479_v44 = vunpack.c.h.s8.bf16 %v359_v36  ;;  %v866_v23 = vunpack.c.h.s8.bf16 %v798_v10  ;;  %v806_v36 = vld [vmem:[#allocation8 + $0x58] sm:$0xff] }
 0x137   :  { %543 = vmatpush1.bf16.msra.mxu0 %v435_v31  ;;  %629 = vmatpush1.bf16.msra.mxu1 %v437_v32  ;;  %v362_v31 = vld [vmem:[#allocation7 + $0x1b8] sm:$0xff]  ;;  %v471_v32 = vunpack.c.h.s8.bf16 %v355_v22  ;;  %v864_v22 = vunpack.c.h.s8.bf16 %v796_v9 }
 0x138   :  { %544 = vmatprep.subr.bf16.mxu0 %v440_v34  ;;  %630 = vmatprep.subr.bf16.mxu1 %v442_v35  ;;  %v476_v34 = vunpack.c.l.s8.bf16 %v360_v30  ;;  %v478_v35 = vunpack.c.l.s8.bf16 %v362_v31 }
 0x139   :  { %574 = vmatprep.mubr.bf16.mxu0 %v306_v39  ;;  %660 = vmatprep.mubr.bf16.mxu1 %v306_v39  ;;  %v477_v39 = vunpack.c.l.s8.bf16 %v361_v37 }
 0x13b   :  { %545 = vmatpush1.bf16.msra.mxu0 %v439_v40  ;;  %631 = vmatpush1.bf16.msra.mxu1 %v441_v41  ;;  %v480_v40 = vunpack.c.h.s8.bf16 %v360_v30  ;;  %v482_v41 = vunpack.c.h.s8.bf16 %v362_v31  ;;  %v801_v30 = vld [vmem:[#allocation8 + $0x30] sm:$0xff] }
 0x13c   :  { %546 = vmatprep.subr.bf16.mxu0 %v444_v42  ;;  %632 = vmatprep.subr.bf16.mxu1 %v446_v43  ;;  %v364_v42 = vld [vmem:[#allocation7 + $0x1c8] sm:$0xff]  ;;  %v366_v43 = vld [vmem:[#allocation7 + $0x1d8] sm:$0xff] }
 0x13f   :  { %547 = vmatpush1.bf16.msra.mxu0 %v443_v46  ;;  %633 = vmatpush1.bf16.msra.mxu1 %v445_v47  ;;  %v484_v46 = vunpack.c.l.s8.bf16 %v364_v42  ;;  %v486_v47 = vunpack.c.l.s8.bf16 %v366_v43 }
 0x140   :  { %548 = vmatprep.subr.bf16.mxu0 %v448_v48  ;;  %634 = vmatprep.subr.bf16.mxu1 %v450_v49  ;;  %v363_v48 = vld [vmem:[#allocation7 + $0x1c0] sm:$0xff]  ;;  %v365_v49 = vld [vmem:[#allocation7 + $0x1d0] sm:$0xff] }
 0x141   :  { %v483_v50 = vunpack.c.l.s8.bf16 %v363_v48  ;;  %v485_v51 = vunpack.c.l.s8.bf16 %v365_v49  ;;  %v487_v57 = vunpack.c.h.s8.bf16 %v363_v48  ;;  %v810_v48 = vld [vmem:[#allocation8 + $0x78] sm:$0xff] }
 0x143   :  { %549 = vmatpush1.bf16.msra.mxu0 %v447_v52  ;;  %635 = vmatpush1.bf16.msra.mxu1 %v449_v53  ;;  %v269_v52 = vcombine.high %v1636_v4, %v1636_v4  ;;  %v488_v53 = vunpack.c.h.s8.bf16 %v364_v42  ;;  %v805_v42 = vld [vmem:[#allocation8 + $0x50] sm:$0xff] }
 0x144   :  { %550 = vmatprep.subr.bf16.mxu0 %v452_v54  ;;  %636 = vmatprep.subr.bf16.mxu1 %v454_v55  ;;  %v490_v54 = vunpack.c.h.s8.bf16 %v366_v43  ;;  %v368_v55 = vld [vmem:[#allocation7 + $0x1e8] sm:$0xff] }
 0x147   :  { %551 = vmatpush1.bf16.msra.mxu0 %v451_v58  ;;  %637 = vmatpush1.bf16.msra.mxu1 %v453_v59  ;;  %v489_v58 = vunpack.c.h.s8.bf16 %v365_v49  ;;  %v286_v59 = vpack.i.b16 %v269_v52, %v269_v52  ;;  %v886_v52 = vunpack.c.l.s8.bf16 %v810_v48 }
 0x148   :  { %552 = vmatprep.subr.bf16.mxu0 %v456_v60  ;;  %638 = vmatprep.subr.bf16.mxu1 %v458_v61  ;;  %v492_v60 = vunpack.c.l.s8.bf16 %v368_v55  ;;  %v494_v61 = vunpack.c.l.s8.bf16 %v370_v56 }
 0x149   :  { %v291_v4 = vrot.slane %v286_v59, %v1642_v7  ;;  %v812_v59 = vld [vmem:[#allocation8 + $0x88] sm:$0xff] }
 0x14b   :  { %553 = vmatpush1.bf16.msra.mxu0 %v455_v3  ;;  %639 = vmatpush1.bf16.msra.mxu1 %v457_v5  ;;  %v491_v3 = vunpack.c.l.s8.bf16 %v367_v62  ;;  %v493_v5 = vunpack.c.l.s8.bf16 %v369_v0 }
 0x14c   :  { %554 = vmatprep.subr.bf16.mxu0 %v460_v6  ;;  %640 = vmatprep.subr.bf16.mxu1 %v462_v8  ;;  %v496_v6 = vunpack.c.h.s8.bf16 %v368_v55  ;;  %v498_v8 = vunpack.c.h.s8.bf16 %v370_v56 }
 0x14f   :  { %555 = vmatpush1.bf16.msra.mxu0 %v459_v11  ;;  %641 = vmatpush1.bf16.msra.mxu1 %v461_v12  ;;  %v495_v11 = vunpack.c.h.s8.bf16 %v367_v62  ;;  %v497_v12 = vunpack.c.h.s8.bf16 %v369_v0  ;;  %v892_v0 = vunpack.c.l.s8.bf16 %v812_v59 }
 0x150   :  { %556 = vmatprep.subr.bf16.mxu0 %v464_v13  ;;  %642 = vmatprep.subr.bf16.mxu1 %v466_v14  ;;  %v301_v13 = vadd.bf16 %v291_v4, %v243_v27  ;;  %v860_v14 = vunpack.c.l.s8.bf16 %v796_v9  ;;  %v813_v4 = vld [vmem:[#allocation8 + $0x90] sm:$0xff]  ;;  %v896_v9 = vunpack.c.h.s8.bf16 %v812_v59 }
 0x153   :  { %557 = vmatpush1.bf16.msra.mxu0 %v463_v17  ;;  %643 = vmatpush1.bf16.msra.mxu1 %v465_v19  ;;  %v797_v17 = vld [vmem:[#allocation8 + $0x10] sm:$0xff]  ;;  %v859_v19 = vunpack.c.l.s8.bf16 %v795_v16 }
 0x154   :  { %558 = vmatprep.subr.bf16.mxu0 %v468_v20  ;;  %644 = vmatprep.subr.bf16.mxu1 %v470_v21  ;;  %v861_v20 = vunpack.c.l.s8.bf16 %v797_v17  ;;  %v305_v21 = vmax.bf16 %v1509_v1, %v301_v13  ;;  %v865_v24 = vunpack.c.h.s8.bf16 %v797_v17  ;;  %v815_v17 = vld [vmem:[#allocation8 + $0xa0] sm:$0xff] }
 0x157   :  { %559 = vmatpush1.bf16.msra.mxu0 %v467_v25  ;;  %645 = vmatpush1.bf16.msra.mxu1 %v469_v26  ;;  %v800_v25 = vld [vmem:[#allocation8 + $0x28] sm:$0xff]  ;;  %v802_v26 = vld [vmem:[#allocation8 + $0x38] sm:$0xff] }
 0x158   :  { %560 = vmatprep.subr.bf16.mxu0 %v472_v28  ;;  %646 = vmatprep.subr.bf16.mxu1 %v474_v29  ;;  %v868_v27 = vunpack.c.l.s8.bf16 %v800_v25  ;;  %v870_v28 = vunpack.c.l.s8.bf16 %v802_v26  ;;  %v799_v29 = vld [vmem:[#allocation8 + $0x20] sm:$0xff] }
 0x159   :  { %v867_v31 = vunpack.c.l.s8.bf16 %v799_v29  ;;  %v871_v37 = vunpack.c.h.s8.bf16 %v799_v29  ;;  %v819_v29 = vld [vmem:[#allocation8 + $0xc0] sm:$0xff] }
 0x15b   :  { %561 = vmatpush1.bf16.msra.mxu0 %v471_v32  ;;  %647 = vmatpush1.bf16.msra.mxu1 %v473_v33  ;;  %v869_v32 = vunpack.c.l.s8.bf16 %v801_v30  ;;  %v872_v33 = vunpack.c.h.s8.bf16 %v800_v25  ;;  %v820_v25 = vld [vmem:[#allocation8 + $0xc8] sm:$0xff] }
 0x15c   :  { %562 = vmatprep.subr.bf16.mxu0 %v476_v34  ;;  %648 = vmatprep.subr.bf16.mxu1 %v478_v35  ;;  %v874_v34 = vunpack.c.h.s8.bf16 %v802_v26  ;;  %v804_v35 = vld [vmem:[#allocation8 + $0x48] sm:$0xff]  ;;  %v822_v26 = vld [vmem:[#allocation8 + $0xd8] sm:$0xff] }
 0x15f   :  { %563 = vmatpush1.bf16.msra.mxu0 %v475_v38  ;;  %649 = vmatpush1.bf16.msra.mxu1 %v477_v39  ;;  %v873_v38 = vunpack.c.h.s8.bf16 %v801_v30  ;;  %v876_v39 = vunpack.c.l.s8.bf16 %v804_v35  ;;  %v821_v30 = vld [vmem:[#allocation8 + $0xd0] sm:$0xff] }
 0x160   :  { %564 = vmatprep.subr.bf16.mxu0 %v480_v40  ;;  %650 = vmatprep.subr.bf16.mxu1 %v482_v41  ;;  %v878_v40 = vunpack.c.l.s8.bf16 %v806_v36  ;;  %v803_v41 = vld [vmem:[#allocation8 + $0x40] sm:$0xff] }
 0x161   :  { %v875_v43 = vunpack.c.l.s8.bf16 %v803_v41  ;;  %v879_v49 = vunpack.c.h.s8.bf16 %v803_v41  ;;  %v825_v41 = vld [vmem:[#allocation8 + $0xf0] sm:$0xff] }
 0x163   :  { %565 = vmatpush1.bf16.msra.mxu0 %v479_v44  ;;  %651 = vmatpush1.bf16.msra.mxu1 %v481_v45  ;;  %v877_v44 = vunpack.c.l.s8.bf16 %v805_v42  ;;  %v880_v45 = vunpack.c.h.s8.bf16 %v804_v35  ;;  %v911_v35 = vunpack.c.h.s8.bf16 %v819_v29 }
 0x164   :  { %566 = vmatprep.subr.bf16.mxu0 %v484_v46  ;;  %652 = vmatprep.subr.bf16.mxu1 %v486_v47  ;;  %v882_v46 = vunpack.c.h.s8.bf16 %v806_v36  ;;  %v808_v47 = vld [vmem:[#allocation8 + $0x68] sm:$0xff]  ;;  %v913_v36 = vunpack.c.h.s8.bf16 %v821_v30 }
 0x167   :  { %567 = vmatpush1.bf16.msra.mxu0 %v483_v50  ;;  %653 = vmatpush1.bf16.msra.mxu1 %v485_v51  ;;  %v881_v50 = vunpack.c.h.s8.bf16 %v805_v42  ;;  %v884_v51 = vunpack.c.l.s8.bf16 %v808_v47 }
 0x168   :  { %568 = vmatprep.subr.bf16.mxu0 %v488_v53  ;;  %654 = vmatprep.subr.bf16.mxu1 %v490_v54  ;;  %v807_v53 = vld [vmem:[#allocation8 + $0x60] sm:$0xff]  ;;  %v809_v54 = vld [vmem:[#allocation8 + $0x70] sm:$0xff] }
 0x169   :  { %v883_v55 = vunpack.c.l.s8.bf16 %v807_v53  ;;  %v885_v56 = vunpack.c.l.s8.bf16 %v809_v54  ;;  %v889_v62 = vunpack.c.h.s8.bf16 %v809_v54  ;;  %v1362_v54 = vld.sshfl [vmem:[%s1754_s5] sm:$0x33 pattern:$0x75316420] }
 0x16b   :  { %569 = vmatpush1.bf16.msra.mxu0 %v487_v57  ;;  %655 = vmatpush1.bf16.msra.mxu1 %v489_v58  ;;  %v888_v57 = vunpack.c.h.s8.bf16 %v808_v47  ;;  %v890_v58 = vunpack.c.h.s8.bf16 %v810_v48  ;;  %v921_v48 = vunpack.c.h.s8.bf16 %v825_v41 }
 0x16c   :  { %570 = vmatprep.subr.bf16.mxu0 %v492_v60  ;;  %656 = vmatprep.subr.bf16.mxu1 %v494_v61  ;;  %v814_v60 = vld [vmem:[#allocation8 + $0x98] sm:$0xff]  ;;  %v887_v61 = vunpack.c.h.s8.bf16 %v807_v53 }
 0x16d   :  { %v898_v10 = vunpack.c.h.s8.bf16 %v814_v60  ;;  %v1361_v53 = vld.sshfl [vmem:[%s1753_s4] sm:$0x33 pattern:$0x75316420] }
 0x16f   :  { %571 = vmatpush1.bf16.msra.mxu0 %v491_v3  ;;  %657 = vmatpush1.bf16.msra.mxu1 %v493_v5  ;;  %v894_v3 = vunpack.c.l.s8.bf16 %v814_v60  ;;  %v811_v5 = vld [vmem:[#allocation8 + $0x80] sm:$0xff]  ;;  %v1678_v60 = vrot.slane %v1361_v53, %v1633_v2 }
 0x170   :  { %572 = vmatprep.subr.bf16.mxu0 %v496_v6  ;;  %658 = vmatprep.subr.bf16.mxu1 %v498_v8  ;;  %v891_v6 = vunpack.c.l.s8.bf16 %v811_v5  ;;  %v893_v8 = vunpack.c.l.s8.bf16 %v813_v4  ;;  %v895_v13 = vunpack.c.h.s8.bf16 %v811_v5 }
 0x173   :  { %573 = vmatpush1.bf16.msra.mxu0 %v495_v11  ;;  %659 = vmatpush1.bf16.msra.mxu1 %v497_v12  ;;  %v816_v11 = vld [vmem:[#allocation8 + $0xa8] sm:$0xff]  ;;  %v818_v12 = vld [vmem:[#allocation8 + $0xb8] sm:$0xff] }
 0x174   :  { %987 = vmatprep.subr.bf16.mxu0 %v860_v14  ;;  %1073 = vmatprep.subr.bf16.mxu1 %v862_v15  ;;  %v897_v14 = vunpack.c.h.s8.bf16 %v813_v4  ;;  %v900_v15 = vunpack.c.l.s8.bf16 %v816_v11  ;;  %v902_v16 = vunpack.c.l.s8.bf16 %v818_v12 }
 0x176   :  { %575 = vmatmul.mubr.bf16.vlgmr.msra.gmra.mrb[4].mxu0 %v305_v21  ;;  %661 = vmatmul.mubr.bf16.vlgmr.msra.gmra.mrb[4].mxu1 %v305_v21 }
 0x177   :  { %988 = vmatpush1.bf16.msra.mxu0 %v859_v19  ;;  %1074 = vmatpush1.bf16.msra.mxu1 %v861_v20  ;;  %v817_v19 = vld [vmem:[#allocation8 + $0xb0] sm:$0xff]  ;;  %v899_v20 = vunpack.c.l.s8.bf16 %v815_v17 }
 0x178   :  { %989 = vmatprep.subr.bf16.mxu0 %v864_v22  ;;  %1075 = vmatprep.subr.bf16.mxu1 %v866_v23  ;;  %v901_v21 = vunpack.c.l.s8.bf16 %v817_v19  ;;  %v904_v22 = vunpack.c.h.s8.bf16 %v816_v11  ;;  %v906_v23 = vunpack.c.h.s8.bf16 %v818_v12 }
 0x17b   :  { %990 = vmatpush1.bf16.msra.mxu0 %v863_v18  ;;  %1076 = vmatpush1.bf16.msra.mxu1 %v865_v24  ;;  %v903_v18 = vunpack.c.h.s8.bf16 %v815_v17  ;;  %v905_v24 = vunpack.c.h.s8.bf16 %v817_v19 }
 0x17c   :  { %991 = vmatprep.subr.bf16.mxu0 %v868_v27  ;;  %1077 = vmatprep.subr.bf16.mxu1 %v870_v28  ;;  %v908_v27 = vunpack.c.l.s8.bf16 %v820_v25  ;;  %v910_v28 = vunpack.c.l.s8.bf16 %v822_v26 }
 0x17f   :  { %992 = vmatpush1.bf16.msra.mxu0 %v867_v31  ;;  %1078 = vmatpush1.bf16.msra.mxu1 %v869_v32  ;;  %v907_v31 = vunpack.c.l.s8.bf16 %v819_v29  ;;  %v909_v32 = vunpack.c.l.s8.bf16 %v821_v30 }
 0x180   :  { %993 = vmatprep.subr.bf16.mxu0 %v872_v33  ;;  %1079 = vmatprep.subr.bf16.mxu1 %v874_v34  ;;  %v912_v33 = vunpack.c.h.s8.bf16 %v820_v25  ;;  %v914_v34 = vunpack.c.h.s8.bf16 %v822_v26 }
 0x183   :  { %994 = vmatpush1.bf16.msra.mxu0 %v871_v37  ;;  %1080 = vmatpush1.bf16.msra.mxu1 %v873_v38  ;;  %v824_v37 = vld [vmem:[#allocation8 + $0xe8] sm:$0xff] }
 0x184   :  { %995 = vmatprep.subr.bf16.mxu0 %v876_v39  ;;  %1081 = vmatprep.subr.bf16.mxu1 %v878_v40  ;;  %v916_v38 = vunpack.c.l.s8.bf16 %v824_v37  ;;  %v826_v39 = vld [vmem:[#allocation8 + $0xf8] sm:$0xff]  ;;  %v823_v40 = vld [vmem:[#allocation8 + $0xe0] sm:$0xff] }
 0x185   :  { %v918_v42 = vunpack.c.l.s8.bf16 %v826_v39  ;;  %v919_v47 = vunpack.c.h.s8.bf16 %v823_v40 }
 0x187   :  { %996 = vmatpush1.bf16.msra.mxu0 %v875_v43  ;;  %1082 = vmatpush1.bf16.msra.mxu1 %v877_v44  ;;  %v915_v43 = vunpack.c.l.s8.bf16 %v823_v40  ;;  %v917_v44 = vunpack.c.l.s8.bf16 %v825_v41  ;;  %v832_v41 = vld [vmem:[#allocation8 + $0x128] sm:$0xff] }
 0x188   :  { %997 = vmatprep.subr.bf16.mxu0 %v880_v45  ;;  %1083 = vmatprep.subr.bf16.mxu1 %v882_v46  ;;  %v920_v45 = vunpack.c.h.s8.bf16 %v824_v37  ;;  %v922_v46 = vunpack.c.h.s8.bf16 %v826_v39 }
 0x18b   :  { %998 = vmatpush1.bf16.msra.mxu0 %v879_v49  ;;  %1084 = vmatpush1.bf16.msra.mxu1 %v881_v50  ;;  %v1663_v49 = vld [vmem:[#allocation8 + $0x108] sm:$0xff]  ;;  %v1665_v50 = vld [vmem:[#allocation8 + $0x118] sm:$0xff] }
 0x18c   :  { %999 = vmatprep.subr.bf16.mxu0 %v884_v51  ;;  %1085 = vmatprep.subr.bf16.mxu1 %v886_v52  ;;  %v924_v51 = vunpack.c.l.s8.bf16 %v1663_v49  ;;  %v926_v52 = vunpack.c.l.s8.bf16 %v1665_v50  ;;  %v928_v39 = vunpack.c.h.s8.bf16 %v1663_v49  ;;  %v930_v40 = vunpack.c.h.s8.bf16 %v1665_v50 }
 0x18f   :  { %1000 = vmatpush1.bf16.msra.mxu0 %v883_v55  ;;  %1086 = vmatpush1.bf16.msra.mxu1 %v885_v56  ;;  %v684_v55 = vcombine.high %v1361_v53, %v1361_v53  ;;  %v742_v56 = vcombine.high %v1362_v54, %v1362_v54 }
 0x190   :  { %1001 = vmatprep.subr.bf16.mxu0 %v888_v57  ;;  %1087 = vmatprep.subr.bf16.mxu1 %v890_v58 }
 0x191   :  { %v698_v57 = vrot.slane %v684_v55, %v1633_v2  ;;  %v756_v58 = vrot.slane %v742_v56, %v1633_v2  ;;  %v838_v55 = vld [vmem:[#allocation8 + $0x158] sm:$0xff] }
 0x193   :  { %1002 = vmatpush1.bf16.msra.mxu0 %v887_v61  ;;  %1088 = vmatpush1.bf16.msra.mxu1 %v889_v62  ;;  %v700_v59 = vcombine.high %v698_v57, %v698_v57  ;;  %v702_v61 = vpack.i.b16 %v1678_v60, %v1678_v60  ;;  %v1683_v62 = vrot.slane %v1362_v54, %v1633_v2  ;;  %v836_v54 = vld [vmem:[#allocation8 + $0x148] sm:$0xff] }
 0x194   :  { %1003 = vmatprep.subr.bf16.mxu0 %v892_v0  ;;  %1089 = vmatprep.subr.bf16.mxu1 %v894_v3  ;;  %v758_v0 = vcombine.high %v756_v58, %v756_v58  ;;  %v709_v3 = vpack.i.b16 %v698_v57, %v698_v57 }
 0x195   :  { %v723_v5 = vpack.i.b16 %v700_v59, %v700_v59  ;;  %v760_v4 = vpack.i.b16 %v1683_v62, %v1683_v62  ;;  %v707_v12 = vrot.slane %v702_v61, %v1642_v7  ;;  %v942_v59 = vunpack.c.l.s8.bf16 %v838_v55  ;;  %v835_v61 = vld [vmem:[#allocation8 + $0x140] sm:$0xff] }
 0x197   :  { %1004 = vmatpush1.bf16.msra.mxu0 %v891_v6  ;;  %1090 = vmatpush1.bf16.msra.mxu1 %v893_v8  ;;  %v728_v17 = vrot.slane %v723_v5, %v1642_v7 }
 0x198   :  { %1005 = vmatprep.subr.bf16.mxu0 %v896_v9  ;;  %1091 = vmatprep.subr.bf16.mxu1 %v898_v10  ;;  %v767_v9 = vpack.i.b16 %v756_v58, %v756_v58  ;;  %v940_v58 = vunpack.c.l.s8.bf16 %v836_v54 }
 0x19a   :  { %v772_v26 = vrot.slane %v767_v9, %v1642_v7  ;;  %v840_v9 = vld [vmem:[#allocation8 + $0x168] sm:$0xff] }
 0x19b   :  { %1006 = vmatpush1.bf16.msra.mxu0 %v895_v13  ;;  %1092 = vmatpush1.bf16.msra.mxu1 %v897_v14  ;;  %v781_v13 = vpack.i.b16 %v758_v0, %v758_v0  ;;  %v837_v0 = vld [vmem:[#allocation8 + $0x150] sm:$0xff] }
 0x19c   :  { %1007 = vmatprep.subr.bf16.mxu0 %v900_v15  ;;  %1093 = vmatprep.subr.bf16.mxu1 %v902_v16  ;;  %v714_v16 = vrot.slane %v709_v3, %v1642_v7  ;;  %v939_v3 = vunpack.c.l.s8.bf16 %v835_v61  ;;  %v941_v5 = vunpack.c.l.s8.bf16 %v837_v0 }
 0x19f   :  { %1008 = vmatpush1.bf16.msra.mxu0 %v899_v20  ;;  %1094 = vmatpush1.bf16.msra.mxu1 %v901_v21  ;;  %v765_v20 = vrot.slane %v760_v4, %v1642_v7  ;;  %v944_v4 = vunpack.c.h.s8.bf16 %v836_v54  ;;  %v851_v54 = vld [vmem:[#allocation8 + $0x1c0] sm:$0xff] }
 0x1a0   :  { %1009 = vmatprep.subr.bf16.mxu0 %v904_v22  ;;  %1095 = vmatprep.subr.bf16.mxu1 %v906_v23 }
 0x1a3   :  { %1010 = vmatpush1.bf16.msra.mxu0 %v903_v18  ;;  %1096 = vmatpush1.bf16.msra.mxu1 %v905_v24 }
 0x1a4   :  { %1011 = vmatprep.subr.bf16.mxu0 %v908_v27  ;;  %1097 = vmatprep.subr.bf16.mxu1 %v910_v28  ;;  %v786_v27 = vrot.slane %v781_v13, %v1642_v7  ;;  %v948_v13 = vunpack.c.l.s8.bf16 %v840_v9 }
 0x1a7   :  { %1012 = vmatpush1.bf16.msra.mxu0 %v907_v31  ;;  %1098 = vmatpush1.bf16.msra.mxu1 %v909_v32  ;;  %v827_v31 = vld [vmem:[#allocation8 + $0x100] sm:$0xff]  ;;  %v829_v32 = vld [vmem:[#allocation8 + $0x110] sm:$0xff] }
 0x1a8   :  { %1013 = vmatprep.subr.bf16.mxu0 %v912_v33  ;;  %1099 = vmatprep.subr.bf16.mxu1 %v914_v34  ;;  %v925_v37 = vunpack.c.l.s8.bf16 %v829_v32 }
 0x1ab   :  { %1014 = vmatpush1.bf16.msra.mxu0 %v911_v35  ;;  %1100 = vmatpush1.bf16.msra.mxu1 %v913_v36  ;;  %v923_v36 = vunpack.c.l.s8.bf16 %v827_v31 }
 0x1ac   :  { %1015 = vmatprep.subr.bf16.mxu0 %v916_v38  ;;  %1101 = vmatprep.subr.bf16.mxu1 %v918_v42  ;;  %v834_v42 = vld [vmem:[#allocation8 + $0x138] sm:$0xff] }
 0x1ad   :  { %v938_v53 = vunpack.c.h.s8.bf16 %v834_v42 }
 0x1af   :  { %1016 = vmatpush1.bf16.msra.mxu0 %v915_v43  ;;  %1102 = vmatpush1.bf16.msra.mxu1 %v917_v44  ;;  %v927_v44 = vunpack.c.h.s8.bf16 %v827_v31 }
 0x1b0   :  { %1017 = vmatprep.subr.bf16.mxu0 %v920_v45  ;;  %1103 = vmatprep.subr.bf16.mxu1 %v922_v46  ;;  %v929_v45 = vunpack.c.h.s8.bf16 %v829_v32  ;;  %v932_v46 = vunpack.c.l.s8.bf16 %v832_v41 }
 0x1b3   :  { %1018 = vmatpush1.bf16.msra.mxu0 %v919_v47  ;;  %1104 = vmatpush1.bf16.msra.mxu1 %v921_v48  ;;  %v934_v47 = vunpack.c.l.s8.bf16 %v834_v42  ;;  %v831_v48 = vld [vmem:[#allocation8 + $0x120] sm:$0xff]  ;;  %v849_v42 = vld [vmem:[#allocation8 + $0x1b0] sm:$0xff] }
 0x1b4   :  { %1030 = vmatprep.subr.bf16.mxu0 %v924_v51  ;;  %1116 = vmatprep.subr.bf16.mxu1 %v926_v52  ;;  %v833_v51 = vld [vmem:[#allocation8 + $0x130] sm:$0xff]  ;;  %v931_v49 = vunpack.c.l.s8.bf16 %v831_v48  ;;  %v936_v52 = vunpack.c.h.s8.bf16 %v832_v41  ;;  %v935_v56 = vunpack.c.h.s8.bf16 %v831_v48  ;;  %v847_v41 = vld [vmem:[#allocation8 + $0x1a0] sm:$0xff]  ;;  %v854_v48 = vld [vmem:[#allocation8 + $0x1d8] sm:$0xff] }
 0x1b5   :  { %v933_v50 = vunpack.c.l.s8.bf16 %v833_v51  ;;  %v937_v57 = vunpack.c.h.s8.bf16 %v833_v51  ;;  %v967_v51 = vunpack.c.h.s8.bf16 %v847_v41 }
 0x249   :  { %v576_v6 = vpop.f32.mrb[4].mxu0  ;;  %v1687_v8 = vpop.f32.mrb[4].mxu1 }
 0x24a   :  { %v578_v10 = vpop.f32.mrb[5].mxu0  ;;  %v664_v11 = vpop.f32.mrb[5].mxu1 }
 0x24b   :  { %v580_v14 = vpop.f32.mrb[6].mxu0  ;;  %v1690_v15 = vpop.f32.mrb[6].mxu1 }
 0x24c   :  { %v671_v19 = vpack.c.bf16 %v580_v14, %v576_v6  ;;  %v673_v21 = vpack.c.bf16 %v1690_v15, %v1687_v8  ;;  %v582_v22 = vpop.f32.mrb[7].mxu0  ;;  %v668_v23 = vpop.f32.mrb[7].mxu1  ;;  %v946_v6 = vunpack.c.h.s8.bf16 %v838_v55  ;;  %v853_v55 = vld [vmem:[#allocation8 + $0x1d0] sm:$0xff] }
 0x24d   :  { %v672_v25 = vpack.c.bf16 %v582_v22, %v578_v10  ;;  %v674_v18 = vpack.c.bf16 %v668_v23, %v664_v11  ;;  %v842_v10 = vld [vmem:[#allocation8 + $0x178] sm:$0xff]  ;;  %v943_v11 = vunpack.c.h.s8.bf16 %v835_v61  ;;  %v952_v22 = vunpack.c.h.s8.bf16 %v840_v9 }
 0x24e   :  { %v729_v24 = vmul.bf16 %v707_v12, %v671_v19  ;;  %v945_v12 = vunpack.c.h.s8.bf16 %v837_v0  ;;  %v950_v14 = vunpack.c.l.s8.bf16 %v842_v10  ;;  %v954_v23 = vunpack.c.h.s8.bf16 %v842_v10  ;;  %v1363_v8 = vld.sshfl [vmem:[%s1756_s7] sm:$0x33 pattern:$0x75316420] }
 0x24f   :  { %v730_v28 = vmul.bf16 %v714_v16, %v672_v25  ;;  %v732_v29 = vmul.bf16 %v728_v17, %v674_v18  ;;  %v839_v16 = vld [vmem:[#allocation8 + $0x160] sm:$0xff]  ;;  %v841_v17 = vld [vmem:[#allocation8 + $0x170] sm:$0xff]  ;;  %v844_v25 = vld [vmem:[#allocation8 + $0x188] sm:$0xff]  ;;  %v978_v0 = vunpack.c.h.s8.bf16 %v854_v48 }
 0x250   :  { %v787_v30 = vadd.bf16 %v765_v20, %v729_v24  ;;  %v947_v19 = vunpack.c.l.s8.bf16 %v839_v16  ;;  %v949_v20 = vunpack.c.l.s8.bf16 %v841_v17  ;;  %v951_v18 = vunpack.c.h.s8.bf16 %v839_v16  ;;  %v1364_v15 = vld.sshfl [vmem:[%s1757_s8] sm:$0x33 pattern:$0x75316420] }
 0x251   :  { %v788_v33 = vadd.bf16 %v772_v26, %v730_v28  ;;  %v790_v34 = vadd.bf16 %v786_v27, %v732_v29  ;;  %v846_v26 = vld [vmem:[#allocation8 + $0x198] sm:$0xff]  ;;  %v953_v24 = vunpack.c.h.s8.bf16 %v841_v17  ;;  %v956_v27 = vunpack.c.l.s8.bf16 %v844_v25  ;;  %v843_v29 = vld [vmem:[#allocation8 + $0x180] sm:$0xff] }
 0x252   :  { %v791_v38 = vmax.bf16 %v1509_v1, %v787_v30  ;;  %v958_v28 = vunpack.c.l.s8.bf16 %v846_v26  ;;  %v845_v30 = vld [vmem:[#allocation8 + $0x190] sm:$0xff]  ;;  %v955_v31 = vunpack.c.l.s8.bf16 %v843_v29 }
 0x253   :  { %v792_v35 = vmax.bf16 %v1509_v1, %v788_v33  ;;  %v794_v43 = vmax.bf16 %v1509_v1, %v790_v34  ;;  %v957_v32 = vunpack.c.l.s8.bf16 %v845_v30  ;;  %v960_v33 = vunpack.c.h.s8.bf16 %v844_v25 }
 0x254   :  { %v962_v34 = vunpack.c.h.s8.bf16 %v846_v26 }
 0x255   :  { %1019 = vmatprep.mubr.bf16.mxu0 %v792_v35  ;;  %1105 = vmatprep.mubr.bf16.mxu1 %v792_v35  ;;  %v848_v35 = vld [vmem:[#allocation8 + $0x1a8] sm:$0xff] }
 0x256   :  { %1020 = vmatmul.mubr.bf16.vlgmr.msra.gmra.mrb[8].mxu0 %v791_v38  ;;  %1106 = vmatmul.mubr.bf16.vlgmr.msra.gmra.mrb[8].mxu1 %v791_v38  ;;  %v961_v38 = vunpack.c.h.s8.bf16 %v845_v30 }
 0x257   :  { %1031 = vmatpush1.bf16.msra.mxu0 %v923_v36  ;;  %1117 = vmatpush1.bf16.msra.mxu1 %v925_v37  ;;  %v850_v36 = vld [vmem:[#allocation8 + $0x1b8] sm:$0xff]  ;;  %v959_v37 = vunpack.c.h.s8.bf16 %v843_v29 }
 0x258   :  { %1062 = vmatprep.mubr.bf16.mxu0 %v794_v43  ;;  %1148 = vmatprep.mubr.bf16.mxu1 %v794_v43  ;;  %v963_v43 = vunpack.c.l.s8.bf16 %v847_v41 }
 0x259   :  { %1032 = vmatprep.subr.bf16.mxu0 %v928_v39  ;;  %1118 = vmatprep.subr.bf16.mxu1 %v930_v40  ;;  %v964_v39 = vunpack.c.l.s8.bf16 %v848_v35  ;;  %v966_v40 = vunpack.c.l.s8.bf16 %v850_v36 }
 0x25b   :  { %1033 = vmatpush1.bf16.msra.mxu0 %v927_v44  ;;  %1119 = vmatpush1.bf16.msra.mxu1 %v929_v45  ;;  %v965_v44 = vunpack.c.l.s8.bf16 %v849_v42  ;;  %v968_v45 = vunpack.c.h.s8.bf16 %v848_v35 }
 0x25c   :  { %1034 = vmatprep.subr.bf16.mxu0 %v932_v46  ;;  %1120 = vmatprep.subr.bf16.mxu1 %v934_v47  ;;  %v970_v46 = vunpack.c.h.s8.bf16 %v850_v36  ;;  %v852_v47 = vld [vmem:[#allocation8 + $0x1c8] sm:$0xff] }
 0x25d   :  { %v976_v61 = vunpack.c.h.s8.bf16 %v852_v47 }
 0x25f   :  { %1035 = vmatpush1.bf16.msra.mxu0 %v931_v49  ;;  %1121 = vmatpush1.bf16.msra.mxu1 %v933_v50  ;;  %v969_v49 = vunpack.c.h.s8.bf16 %v849_v42  ;;  %v699_v50 = vcombine.high %v1678_v60, %v1678_v60  ;;  %v858_v60 = vld [vmem:[#allocation8 + $0x1f8] sm:$0xff] }
 0x260   :  { %1036 = vmatprep.subr.bf16.mxu0 %v936_v52  ;;  %1122 = vmatprep.subr.bf16.mxu1 %v938_v53  ;;  %v972_v52 = vunpack.c.l.s8.bf16 %v852_v47  ;;  %v974_v53 = vunpack.c.l.s8.bf16 %v854_v48 }
 0x263   :  { %1037 = vmatpush1.bf16.msra.mxu0 %v935_v56  ;;  %1123 = vmatpush1.bf16.msra.mxu1 %v937_v57  ;;  %v971_v56 = vunpack.c.l.s8.bf16 %v851_v54  ;;  %v973_v57 = vunpack.c.l.s8.bf16 %v853_v55 }
 0x264   :  { %1038 = vmatprep.subr.bf16.mxu0 %v940_v58  ;;  %1124 = vmatprep.subr.bf16.mxu1 %v942_v59  ;;  %v716_v58 = vpack.i.b16 %v699_v50, %v699_v50  ;;  %v757_v59 = vcombine.high %v1683_v62, %v1683_v62 }
 0x266   :  { %v774_v9 = vpack.i.b16 %v757_v59, %v757_v59 }
 0x267   :  { %1039 = vmatpush1.bf16.msra.mxu0 %v939_v3  ;;  %1125 = vmatpush1.bf16.msra.mxu1 %v941_v5  ;;  %v856_v3 = vld [vmem:[#allocation8 + $0x1e8] sm:$0xff]  ;;  %v975_v5 = vunpack.c.h.s8.bf16 %v851_v54 }
 0x268   :  { %1040 = vmatprep.subr.bf16.mxu0 %v944_v4  ;;  %1126 = vmatprep.subr.bf16.mxu1 %v946_v6  ;;  %v977_v4 = vunpack.c.h.s8.bf16 %v853_v55  ;;  %v721_v6 = vrot.slane %v716_v58, %v1642_v7  ;;  %v980_v10 = vunpack.c.l.s8.bf16 %v856_v3  ;;  %v779_v17 = vrot.slane %v774_v9, %v1642_v7 }
 0x26a   :  { %v731_v16 = vmul.bf16 %v721_v6, %v673_v21  ;;  %v1172_v21 = vcombine.high %v1363_v8, %v1363_v8  ;;  %v1299_v6 = vsub.s32 1, %v1627_v63 }
 0x26b   :  { %1041 = vmatpush1.bf16.msra.mxu0 %v943_v11  ;;  %1127 = vmatpush1.bf16.msra.mxu1 %v945_v12  ;;  %v982_v11 = vunpack.c.l.s8.bf16 %v858_v60  ;;  %v855_v12 = vld [vmem:[#allocation8 + $0x1e0] sm:$0xff] }
 0x26c   :  { %1042 = vmatprep.subr.bf16.mxu0 %v948_v13  ;;  %1128 = vmatprep.subr.bf16.mxu1 %v950_v14  ;;  %v857_v13 = vld [vmem:[#allocation8 + $0x1f0] sm:$0xff]  ;;  %v979_v62 = vunpack.c.l.s8.bf16 %v855_v12  ;;  %v789_v25 = vadd.bf16 %v779_v17, %v731_v16  ;;  %v1307_v17 = vsub.s32 3, %v1627_v63 }
 0x26d   :  { %v981_v14 = vunpack.c.l.s8.bf16 %v857_v13 }
 0x26e   :  { %v793_v26 = vmax.bf16 %v1509_v1, %v789_v25 }
 0x26f   :  { %1043 = vmatpush1.bf16.msra.mxu0 %v947_v19  ;;  %1129 = vmatpush1.bf16.msra.mxu1 %v949_v20  ;;  %v984_v19 = vunpack.c.h.s8.bf16 %v856_v3  ;;  %v986_v20 = vunpack.c.h.s8.bf16 %v858_v60 }
 0x270   :  { %1044 = vmatprep.subr.bf16.mxu0 %v952_v22  ;;  %1130 = vmatprep.subr.bf16.mxu1 %v954_v23  ;;  %v983_v22 = vunpack.c.h.s8.bf16 %v855_v12  ;;  %v985_v23 = vunpack.c.h.s8.bf16 %v857_v13 }
 0x273   :  { %1045 = vmatpush1.bf16.msra.mxu0 %v951_v18  ;;  %1131 = vmatpush1.bf16.msra.mxu1 %v953_v24  ;;  %v1230_v18 = vcombine.high %v1364_v15, %v1364_v15  ;;  %v1179_v24 = vrot.slane %v1363_v8, %v1633_v2 }
 0x274   :  { %1046 = vmatprep.subr.bf16.mxu0 %v956_v27  ;;  %1132 = vmatprep.subr.bf16.mxu1 %v958_v28  ;;  %v1186_v27 = vrot.slane %v1172_v21, %v1633_v2  ;;  %v1237_v28 = vrot.slane %v1364_v15, %v1633_v2 }
 0x275   :  { %v1244_v29 = vrot.slane %v1230_v18, %v1633_v2  ;;  %v1187_v30 = vcombine.high %v1179_v24, %v1179_v24 }
 0x276   :  { %v1197_v36 = vpack.i.b16 %v1186_v27, %v1186_v27 }
 0x277   :  { %1047 = vmatpush1.bf16.msra.mxu0 %v955_v31  ;;  %1133 = vmatpush1.bf16.msra.mxu1 %v957_v32  ;;  %v1188_v31 = vcombine.high %v1186_v27, %v1186_v27  ;;  %v1245_v32 = vcombine.high %v1237_v28, %v1237_v28  ;;  %v1204_v35 = vpack.i.b16 %v1187_v30, %v1187_v30 }
 0x278   :  { %1048 = vmatprep.subr.bf16.mxu0 %v960_v33  ;;  %1134 = vmatprep.subr.bf16.mxu1 %v962_v34  ;;  %v1246_v33 = vcombine.high %v1244_v29, %v1244_v29  ;;  %v1190_v34 = vpack.i.b16 %v1179_v24, %v1179_v24  ;;  %v1255_v42 = vpack.i.b16 %v1244_v29, %v1244_v29 }
 0x279   :  { %v1209_v2 = vrot.slane %v1204_v35, %v1642_v7 }
 0x27a   :  { %v1260_v58 = vrot.slane %v1255_v42, %v1642_v7 }
 0x27b   :  { %1049 = vmatpush1.bf16.msra.mxu0 %v959_v37  ;;  %1135 = vmatpush1.bf16.msra.mxu1 %v961_v38  ;;  %v1211_v37 = vpack.i.b16 %v1188_v31, %v1188_v31  ;;  %v1248_v38 = vpack.i.b16 %v1237_v28, %v1237_v28 }
 0x27c   :  { %1050 = vmatprep.subr.bf16.mxu0 %v964_v39  ;;  %1136 = vmatprep.subr.bf16.mxu1 %v966_v40  ;;  %v1262_v39 = vpack.i.b16 %v1245_v32, %v1245_v32 }
 0x27e   :  { %v1267_v54 = vrot.slane %v1262_v39, %v1642_v7 }
 0x27f   :  { %1051 = vmatpush1.bf16.msra.mxu0 %v963_v43  ;;  %1137 = vmatpush1.bf16.msra.mxu1 %v965_v44  ;;  %v1269_v43 = vpack.i.b16 %v1246_v33, %v1246_v33 }
 0x280   :  { %1052 = vmatprep.subr.bf16.mxu0 %v968_v45  ;;  %1138 = vmatprep.subr.bf16.mxu1 %v970_v46  ;;  %v1195_v46 = vrot.slane %v1190_v34, %v1642_v7 }
 0x283   :  { %1053 = vmatpush1.bf16.msra.mxu0 %v967_v51  ;;  %1139 = vmatpush1.bf16.msra.mxu1 %v969_v49  ;;  %v1202_v51 = vrot.slane %v1197_v36, %v1642_v7  ;;  %v1216_v49 = vrot.slane %v1211_v37, %v1642_v7 }
 0x284   :  { %1054 = vmatprep.subr.bf16.mxu0 %v972_v52  ;;  %1140 = vmatprep.subr.bf16.mxu1 %v974_v53  ;;  %v1253_v52 = vrot.slane %v1248_v38, %v1642_v7 }
 0x287   :  { %1055 = vmatpush1.bf16.msra.mxu0 %v971_v56  ;;  %1141 = vmatpush1.bf16.msra.mxu1 %v973_v57 }
 0x288   :  { %1056 = vmatprep.subr.bf16.mxu0 %v976_v61  ;;  %1142 = vmatprep.subr.bf16.mxu1 %v978_v0  ;;  %v1274_v61 = vrot.slane %v1269_v43, %v1642_v7 }
 0x28b   :  { %1057 = vmatpush1.bf16.msra.mxu0 %v975_v5  ;;  %1143 = vmatpush1.bf16.msra.mxu1 %v977_v4  ;;  %v1291_v4 = vld [vmem:[%s1758_s9] sm:$0xf] }
 0x28c   :  { %1058 = vmatprep.subr.bf16.mxu0 %v980_v10  ;;  %1144 = vmatprep.subr.bf16.mxu1 %v982_v11  ;;  %v1303_v11 = vsub.s32 2, %v1627_v63  ;;  %v1296_v16 = vrot.slane %v1291_v4, %v1642_v7  ;;  %v1308_v24 = vrot.slane %v1291_v4, %v1307_v17 }
 0x28f   :  { %1059 = vmatpush1.bf16.msra.mxu0 %v979_v62  ;;  %1145 = vmatpush1.bf16.msra.mxu1 %v981_v14 }
 0x290   :  { %1060 = vmatprep.subr.bf16.mxu0 %v984_v19  ;;  %1146 = vmatprep.subr.bf16.mxu1 %v986_v20 }
 0x293   :  { %1061 = vmatpush1.bf16.msra.mxu0 %v983_v22  ;;  %1147 = vmatpush1.bf16.msra.mxu1 %v985_v23  ;;  %v1300_v22 = vrot.slane %v1291_v4, %v1299_v6 }
 0x296   :  { %1063 = vmatmul.mubr.bf16.vlgmr.msra.gmra.mrb[8].mxu0 %v793_v26  ;;  %1149 = vmatmul.mubr.bf16.vlgmr.msra.gmra.mrb[8].mxu1 %v793_v26  ;;  %v1304_v26 = vrot.slane %v1291_v4, %v1303_v11 }
 0x369   :  { %v1064_v40 = vpop.f32.mrb[8].mxu0  ;;  %v1150_v41 = vpop.f32.mrb[8].mxu1 }
 0x36a   :  { %v1066_v44 = vpop.f32.mrb[9].mxu0  ;;  %v1152_v45 = vpop.f32.mrb[9].mxu1 }
 0x36b   :  { %v1068_v47 = vpop.f32.mrb[10].mxu0  ;;  %v1154_v48 = vpop.f32.mrb[10].mxu1 }
 0x36c   :  { %v1159_v50 = vpack.c.bf16 %v1068_v47, %v1064_v40  ;;  %v1161_v53 = vpack.c.bf16 %v1154_v48, %v1150_v41  ;;  %v1070_v55 = vpop.f32.mrb[11].mxu0  ;;  %v1156_v56 = vpop.f32.mrb[11].mxu1  ;;  %v1365_v40 = vld [vmem:[#allocation2] ss:$0 sm:$0xff] }
 0x36d   :  { %v1160_v57 = vpack.c.bf16 %v1070_v55, %v1066_v44  ;;  %v1162_v59 = vpack.c.bf16 %v1156_v56, %v1152_v45 }
 0x36e   :  { %v1217_v0 = vmul.bf16 %v1195_v46, %v1159_v50  ;;  %v1219_v3 = vmul.bf16 %v1209_v2, %v1161_v53 }
 0x36f   :  { %v1218_v60 = vmul.bf16 %v1202_v51, %v1160_v57  ;;  %v1220_v5 = vmul.bf16 %v1216_v49, %v1162_v59 }
 0x370   :  { %v1275_v9 = vadd.bf16 %v1253_v52, %v1217_v0  ;;  %v1277_v10 = vadd.bf16 %v1267_v54, %v1219_v3 }
 0x371   :  { %v1276_v12 = vadd.bf16 %v1260_v58, %v1218_v60  ;;  %v1278_v13 = vadd.bf16 %v1274_v61, %v1220_v5 }
 0x372   :  { %v1279_v62 = vmax.bf16 %v1509_v1, %v1275_v9  ;;  %v1281_v14 = vmax.bf16 %v1509_v1, %v1277_v10 }
 0x373   :  { %v1280_v19 = vmax.bf16 %v1509_v1, %v1276_v12  ;;  %v1282_v20 = vmax.bf16 %v1509_v1, %v1278_v13 }
 0x374   :  { %v1287_v23 = vunpack.c.h.bf16 %v1279_v62  ;;  %v1283_v25 = vunpack.c.l.bf16 %v1279_v62  ;;  %v1285_v21 = vunpack.c.l.bf16 %v1281_v14  ;;  %v1289_v18 = vunpack.c.h.bf16 %v1281_v14 }
 0x375   :  { %v1288_v8 = vunpack.c.h.bf16 %v1280_v19  ;;  %v1284_v15 = vunpack.c.l.bf16 %v1280_v19  ;;  %v1286_v29 = vunpack.c.l.bf16 %v1282_v20  ;;  %v1290_v7 = vunpack.c.h.bf16 %v1282_v20 }
 0x376   :  { %v1313_v27 = vmul.f32 %v1296_v16, %v1283_v25  ;;  %v1317_v28 = vmul.f32 %v1296_v16, %v1287_v23  ;;  %v1315_v63 = vmul.f32 %v1304_v26, %v1285_v21  ;;  %v1319_v33 = vmul.f32 %v1304_v26, %v1289_v18 }
 0x377   :  { %v1314_v30 = vmul.f32 %v1300_v22, %v1284_v15  ;;  %v1318_v31 = vmul.f32 %v1300_v22, %v1288_v8  ;;  %v1316_v1 = vmul.f32 %v1308_v24, %v1286_v29  ;;  %v1320_v36 = vmul.f32 %v1308_v24, %v1290_v7 }
 0x379   :  { %v1321_v32 = vadd.f32 %v1314_v30, %v1313_v27  ;;  %v1326_v34 = vadd.f32 %v1318_v31, %v1317_v28 }
 0x37b   :  { %v1322_v35 = vadd.f32 %v1321_v32, %v1315_v63  ;;  %v1327_v37 = vadd.f32 %v1326_v34, %v1319_v33 }
 0x37d   :  { %v1323_v38 = vadd.f32 %v1322_v35, %v1316_v1  ;;  %v1328_v39 = vadd.f32 %v1327_v37, %v1320_v36 }
 0x37f   :  { %1324 = vadd.xlane.f32.xlu0 %v1323_v38 }
 0x383   :  { %1329 = vadd.xlane.f32.xlu0 %v1328_v39 }
 0x40c   :  { %v1325_v41 = vpop.xlane.xlu0 %1324 }
 0x40d   :  { %v1338_v42 = vadd.f32 %v1365_v40, %v1325_v41 }
 0x40f   :  { %1341 = vst.msk [vmem:[%s1760_s11] sm:$0xff] %vm1340_vm3, %v1338_v42 }
 0x410   :  { %v1330_v43 = vpop.xlane.xlu0 %1329 }
 0x411   :  { %v1339_v44 = vadd.f32 %v1365_v40, %v1330_v43 }
 0x413   :  { %1342 = vst.msk [vmem:[%s1760_s11 + $0x8] sm:$0xff] %vm1340_vm3, %v1339_v44 }
 0x414   :  { %1347 = vsyncpa [#allocation4], 1 }
 0x415   :  { %1348 = vsyncpa [#allocation6], 1 }
 0x416   :  { %1349 = vsyncpa [#allocation9], 1 }

</bundles_post_ra>
